<compile_context>
chip_gen: v5e
topology: v5e:2x2
jax: 0.10.0
libtpu: 0.0.40
codegen_flags: <defaults>
</compile_context>

<pallas_src>
import jax
import jax.numpy as jnp
from jax.experimental import pallas as pl
from jax.experimental.pallas import tpu as pltpu

EMB_DIM = 384
HEAD = 3
HEAD_DIM = EMB_DIM // HEAD            # 128 -> one full lane register width
INV_SQRT_DH = 1.0 / (float(HEAD_DIM) ** 0.5)


def _mhsa_kernel(z_ref, wqkv_ref, wo_ref, bo_ref, o_ref):
    # z block: (Bb, N, E) f32; wqkv: (E, 3E) bf16 (Q cols pre-scaled by
    # 1/sqrt(d_h)); wo: (E, E) bf16; bo: (1, E) f32.
    Bb, N, E = z_ref.shape

    # Flatten batch*patch rows so every projection matmul has M = Bb*N rows.
    z = z_ref[...].reshape(Bb * N, E).astype(jnp.bfloat16)

    # Fused QKV projection: one MXU pass, f32 accumulation.
    qkv = jnp.dot(z, wqkv_ref[...],
                  preferred_element_type=jnp.float32)           # (Bb*N, 3E) f32

    acc = None                                                  # (Bb*N, E) f32
    for h in range(HEAD):                                       # static unroll (3)
        lo = h * HEAD_DIM                                       # 128-aligned lane offset
        qh = qkv[:, lo:lo + HEAD_DIM].astype(jnp.bfloat16).reshape(Bb, N, HEAD_DIM)
        kh = qkv[:, E + lo:E + lo + HEAD_DIM].astype(jnp.bfloat16).reshape(Bb, N, HEAD_DIM)
        vh = qkv[:, 2 * E + lo:2 * E + lo + HEAD_DIM].astype(jnp.bfloat16).reshape(Bb, N, HEAD_DIM)

        # Scores: contract over head_dim without materializing kh.T.
        # (Scale already folded into the Q columns of the fused weight.)
        scores = jnp.einsum("bnd,bmd->bnm", qh, kh,
                            preferred_element_type=jnp.float32)  # (Bb, N, N) f32
        scores = scores - jnp.max(scores, axis=-1, keepdims=True)
        p = jnp.exp(scores)
        denom = jnp.sum(p, axis=-1, keepdims=True)
        attn = (p * pl.reciprocal(denom, approx=True)).astype(jnp.bfloat16)

        oh = jnp.einsum("bnm,bmd->bnd", attn, vh,
                        preferred_element_type=jnp.float32)      # (Bb, N, Dh) f32

        # Per-head output projection accumulation: replaces the head concat.
        # torch's out.transpose(1,2).reshape(B,N,E) @ Wo ==
        #   sum_h out_h @ Wo[h*Dh:(h+1)*Dh, :]
        oh2 = oh.reshape(Bb * N, HEAD_DIM).astype(jnp.bfloat16)
        contrib = jnp.dot(oh2, wo_ref[lo:lo + HEAD_DIM, :],
                          preferred_element_type=jnp.float32)    # (Bb*N, E) f32
        acc = contrib if acc is None else acc + contrib

    out = acc + bo_ref[...]                                      # + bias (1, E)
    o_ref[...] = out.reshape(Bb, N, E).astype(o_ref.dtype)


def _pick_block_batch(B, N):
    # Target ~256 rows per MXU pass (fills v6e/v7x 256-wide MXU; v5e already
    # saturates at 128).  No forced multi-slice split: at small B*N the kernel
    # is weight-DMA/overhead bound, so one grid step is strictly better.
    bb = max(1, min(B, max(1, 256 // max(N, 1))))
    # Shrink to a divisor of B so no grid block ever reads padded (undefined)
    # rows.
    while B % bb != 0:
        bb -= 1
    return bb


def prepare_mhsa_weights(wq, wk, wv, wo, bo):
    """One-time weight preparation (keep out of the per-call forward path).

    Fuses Wq/Wk/Wv into a single (E, 3E) bf16 matrix with 1/sqrt(d_h) folded
    into the Q columns (scaled in f32 before the bf16 cast for accuracy),
    casts Wo to bf16, and reshapes the bias to (1, E) f32.
    """
    wqkv = jnp.concatenate([wq * INV_SQRT_DH, wk, wv], axis=1).astype(jnp.bfloat16)
    wo_b = wo.astype(jnp.bfloat16)
    bo2 = bo.reshape(1, -1).astype(jnp.float32)
    return wqkv, wo_b, bo2


@jax.jit
def mhsa_forward(z, wqkv_bf16, wo_bf16, bo2):
    B, N, E = z.shape
    assert E == EMB_DIM
    assert wqkv_bf16.shape == (E, 3 * E)
    assert wo_bf16.shape == (E, E)
    assert bo2.shape == (1, E)

    Bb = _pick_block_batch(B, N)
    grid = (B // Bb,)                      # Bb divides B -> no padded blocks
    const = lambda b: (0, 0)

    return pl.pallas_call(
        _mhsa_kernel,
        out_shape=jax.ShapeDtypeStruct((B, N, E), z.dtype),
        grid_spec=pltpu.PrefetchScalarGridSpec(
            num_scalar_prefetch=0,
            grid=grid,
            in_specs=[
                pl.BlockSpec((Bb, N, E), lambda b: (b, 0, 0)),   # z
                pl.BlockSpec((E, 3 * E), const),                 # fused wqkv (bf16)
                pl.BlockSpec((E, E), const),                     # wo (bf16)
                pl.BlockSpec((1, E), const),                     # bo (f32)
            ],
            out_specs=pl.BlockSpec((Bb, N, E), lambda b: (b, 0, 0)),
        ),
        # Grid is typically (1,) at small B*N; when it is >1 the axis is
        # independent per batch slice.  Plain parallel/arbitrary semantics have
        # near-zero measured impact, so keep the conservative choice.
        compiler_params=pltpu.CompilerParams(
            dimension_semantics=("arbitrary",)),
    )(z, wqkv_bf16, wo_bf16, bo2)


def mhsa_reference(z, wq, wk, wv, wo, bo):
    B, N, E = z.shape
    q = (z @ wq).reshape(B, N, HEAD, HEAD_DIM).transpose(0, 2, 1, 3)
    k = (z @ wk).reshape(B, N, HEAD, HEAD_DIM).transpose(0, 2, 1, 3)
    v = (z @ wv).reshape(B, N, HEAD, HEAD_DIM).transpose(0, 2, 1, 3)
    dots = jnp.einsum("bhnd,bhmd->bhnm", q, k) * INV_SQRT_DH
    attn = jax.nn.softmax(dots, axis=-1)
    out = jnp.einsum("bhnm,bhmd->bhnd", attn, v)
    out = out.transpose(0, 2, 1, 3).reshape(B, N, E)
    return out @ wo + bo


if __name__ == "__main__":
    key = jax.random.PRNGKey(0)
    k_z, k_q, k_k, k_v, k_o, k_b = jax.random.split(key, 6)

    B, N = 2, 8
    z = jax.random.normal(k_z, (B, N, EMB_DIM), dtype=jnp.float32)

    # Deterministic synthetic parameters (x @ W convention, bias for w_o).
    scale = 0.02
    wq = scale * jax.random.normal(k_q, (EMB_DIM, EMB_DIM), dtype=jnp.float32)
    wk = scale * jax.random.normal(k_k, (EMB_DIM, EMB_DIM), dtype=jnp.float32)
    wv = scale * jax.random.normal(k_v, (EMB_DIM, EMB_DIM), dtype=jnp.float32)
    wo = scale * jax.random.normal(k_o, (EMB_DIM, EMB_DIM), dtype=jnp.float32)
    bo = scale * jax.random.normal(k_b, (EMB_DIM,), dtype=jnp.float32)

    # One-time weight preparation (analogous to module construction), kept
    # outside the per-call forward path.
    wqkv_bf16, wo_bf16, bo2 = prepare_mhsa_weights(wq, wk, wv, wo, bo)
    wqkv_bf16, wo_bf16, bo2 = jax.block_until_ready((wqkv_bf16, wo_bf16, bo2))

    out = mhsa_forward(z, wqkv_bf16, wo_bf16, bo2)
    out = jax.block_until_ready(out)

    ref = mhsa_reference(z, wq, wk, wv, wo, bo)
    assert out.shape == (B, N, EMB_DIM)
    # bf16 MXU inputs with f32 accumulation (+ approx softmax reciprocal)
    # -> relaxed tolerance vs the pure-f32 reference.
    assert jnp.allclose(out, ref, atol=2e-2, rtol=2e-2), "mismatch vs reference"

    # TODO(synk): 'rela' attention_activation branch (LayerNorm created inside
    # forward) not implemented; default softmax path only. Dropout is identity (p=0).
    print("KERNEL_OK")
</pallas_src>

<mosaic_0001>
module attributes {stable_mosaic.version = 11 : i64} {
  func.func @_mhsa_kernel(%arg0: i32, %arg1: memref<2x8x384xf32, #tpu.memory_space<vmem>>, %arg2: memref<384x1152xbf16, #tpu.memory_space<vmem>>, %arg3: memref<384x384xbf16, #tpu.memory_space<vmem>>, %arg4: memref<1x384xf32, #tpu.memory_space<vmem>>, %arg5: memref<2x8x384xf32, #tpu.memory_space<vmem>>) attributes {dimension_semantics = [#tpu.dimension_semantics<arbitrary>], iteration_bounds = array<i64: 1>, scalar_prefetch = 0 : i64, scratch_operands = 0 : i64, tpu.core_type = #tpu.core_type<tc>, window_params = [{transform_indices = @transform_0, window_bounds = array<i64: 2, 8, 384>}, {pipeline_mode = #tpu.pipeline_mode<synchronous>, transform_indices = @transform_1, window_bounds = array<i64: 384, 1152>}, {pipeline_mode = #tpu.pipeline_mode<synchronous>, transform_indices = @transform_2, window_bounds = array<i64: 384, 384>}, {pipeline_mode = #tpu.pipeline_mode<synchronous>, transform_indices = @transform_3, window_bounds = array<i64: 1, 384>}, {transform_indices = @transform_4, window_bounds = array<i64: 2, 8, 384>}]} {
    %c0 = arith.constant 0 : index
    %c0_0 = arith.constant 0 : index
    %c0_1 = arith.constant 0 : index
    %0 = vector.load %arg1[%c0, %c0_0, %c0_1] : memref<2x8x384xf32, #tpu.memory_space<vmem>>, vector<2x8x384xf32>
    %1 = vector.shape_cast %0 : vector<2x8x384xf32> to vector<16x384xf32>
    %2 = arith.truncf %1 : vector<16x384xf32> to vector<16x384xbf16>
    %c0_2 = arith.constant 0 : index
    %c0_3 = arith.constant 0 : index
    %3 = vector.load %arg2[%c0_2, %c0_3] : memref<384x1152xbf16, #tpu.memory_space<vmem>>, vector<384x1152xbf16>
    %cst = arith.constant dense<0.000000e+00> : vector<16x1152xf32>
    %4 = tpu.matmul %2, %3, %cst {dimension_numbers = #tpu.dot_dimension_numbers<[1], [0], [0], [1], [0, 0, 1, 1], [], []>} : vector<16x384xbf16>, vector<384x1152xbf16>, vector<16x1152xf32> -> vector<16x1152xf32>
    %5 = vector.extract_strided_slice %4 {offsets = [0, 0], sizes = [16, 128], strides = [1, 1]} : vector<16x1152xf32> to vector<16x128xf32>
    %6 = arith.truncf %5 : vector<16x128xf32> to vector<16x128xbf16>
    %7 = vector.shape_cast %6 : vector<16x128xbf16> to vector<2x8x128xbf16>
    %8 = vector.extract_strided_slice %4 {offsets = [0, 384], sizes = [16, 128], strides = [1, 1]} : vector<16x1152xf32> to vector<16x128xf32>
    %9 = arith.truncf %8 : vector<16x128xf32> to vector<16x128xbf16>
    %10 = vector.shape_cast %9 : vector<16x128xbf16> to vector<2x8x128xbf16>
    %11 = vector.extract_strided_slice %4 {offsets = [0, 768], sizes = [16, 128], strides = [1, 1]} : vector<16x1152xf32> to vector<16x128xf32>
    %12 = arith.truncf %11 : vector<16x128xf32> to vector<16x128xbf16>
    %13 = vector.shape_cast %12 : vector<16x128xbf16> to vector<2x8x128xbf16>
    "tpu.trace_start"() <{level = 10 : i32, message = "bnd,bmd->bnm"}> : () -> ()
    %cst_4 = arith.constant dense<0.000000e+00> : vector<2x8x8xf32>
    %14 = tpu.matmul %7, %10, %cst_4 {dimension_numbers = #tpu.dot_dimension_numbers<[2], [2], [1], [1], [0, 0, 0, 1, 1, 1], [0], [0]>} : vector<2x8x128xbf16>, vector<2x8x128xbf16>, vector<2x8x8xf32> -> vector<2x8x8xf32>
    "tpu.trace_stop"() : () -> ()
    %cst_5 = arith.constant dense<0xFF800000> : vector<2x8xf32>
    %15 = vector.multi_reduction <maximumf>, %14, %cst_5 [2] : vector<2x8x8xf32> to vector<2x8xf32>
    %16 = vector.shape_cast %15 : vector<2x8xf32> to vector<2x8x1xf32>
    %17 = vector.broadcast %16 : vector<2x8x1xf32> to vector<2x8x8xf32>
    %18 = arith.subf %14, %17 : vector<2x8x8xf32>
    %19 = math.exp %18 : vector<2x8x8xf32>
    %cst_6 = arith.constant dense<0.000000e+00> : vector<2x8xf32>
    %20 = vector.multi_reduction <add>, %19, %cst_6 [2] : vector<2x8x8xf32> to vector<2x8xf32>
    %21 = vector.shape_cast %20 : vector<2x8xf32> to vector<2x8x1xf32>
    %22 = tpu.reciprocal %21 {approx = true} : vector<2x8x1xf32> -> vector<2x8x1xf32>
    %23 = vector.broadcast %22 : vector<2x8x1xf32> to vector<2x8x8xf32>
    %24 = arith.mulf %19, %23 : vector<2x8x8xf32>
    %25 = arith.truncf %24 : vector<2x8x8xf32> to vector<2x8x8xbf16>
    "tpu.trace_start"() <{level = 10 : i32, message = "bnm,bmd->bnd"}> : () -> ()
    %cst_7 = arith.constant dense<0.000000e+00> : vector<2x8x128xf32>
    %26 = tpu.matmul %25, %13, %cst_7 {dimension_numbers = #tpu.dot_dimension_numbers<[2], [1], [1], [2], [0, 0, 0, 1, 1, 2], [0], [0]>} : vector<2x8x8xbf16>, vector<2x8x128xbf16>, vector<2x8x128xf32> -> vector<2x8x128xf32>
    "tpu.trace_stop"() : () -> ()
    %27 = vector.shape_cast %26 : vector<2x8x128xf32> to vector<16x128xf32>
    %28 = arith.truncf %27 : vector<16x128xf32> to vector<16x128xbf16>
    %c0_8 = arith.constant 0 : index
    %c0_9 = arith.constant 0 : index
    %29 = vector.load %arg3[%c0_8, %c0_9] : memref<384x384xbf16, #tpu.memory_space<vmem>>, vector<128x384xbf16>
    %cst_10 = arith.constant dense<0.000000e+00> : vector<16x384xf32>
    %30 = tpu.matmul %28, %29, %cst_10 {dimension_numbers = #tpu.dot_dimension_numbers<[1], [0], [0], [1], [0, 0, 1, 1], [], []>} : vector<16x128xbf16>, vector<128x384xbf16>, vector<16x384xf32> -> vector<16x384xf32>
    %31 = vector.extract_strided_slice %4 {offsets = [0, 128], sizes = [16, 128], strides = [1, 1]} : vector<16x1152xf32> to vector<16x128xf32>
    %32 = arith.truncf %31 : vector<16x128xf32> to vector<16x128xbf16>
    %33 = vector.shape_cast %32 : vector<16x128xbf16> to vector<2x8x128xbf16>
    %34 = vector.extract_strided_slice %4 {offsets = [0, 512], sizes = [16, 128], strides = [1, 1]} : vector<16x1152xf32> to vector<16x128xf32>
    %35 = arith.truncf %34 : vector<16x128xf32> to vector<16x128xbf16>
    %36 = vector.shape_cast %35 : vector<16x128xbf16> to vector<2x8x128xbf16>
    %37 = vector.extract_strided_slice %4 {offsets = [0, 896], sizes = [16, 128], strides = [1, 1]} : vector<16x1152xf32> to vector<16x128xf32>
    %38 = arith.truncf %37 : vector<16x128xf32> to vector<16x128xbf16>
    %39 = vector.shape_cast %38 : vector<16x128xbf16> to vector<2x8x128xbf16>
    "tpu.trace_start"() <{level = 10 : i32, message = "bnd,bmd->bnm"}> : () -> ()
    %cst_11 = arith.constant dense<0.000000e+00> : vector<2x8x8xf32>
    %40 = tpu.matmul %33, %36, %cst_11 {dimension_numbers = #tpu.dot_dimension_numbers<[2], [2], [1], [1], [0, 0, 0, 1, 1, 1], [0], [0]>} : vector<2x8x128xbf16>, vector<2x8x128xbf16>, vector<2x8x8xf32> -> vector<2x8x8xf32>
    "tpu.trace_stop"() : () -> ()
    %cst_12 = arith.constant dense<0xFF800000> : vector<2x8xf32>
    %41 = vector.multi_reduction <maximumf>, %40, %cst_12 [2] : vector<2x8x8xf32> to vector<2x8xf32>
    %42 = vector.shape_cast %41 : vector<2x8xf32> to vector<2x8x1xf32>
    %43 = vector.broadcast %42 : vector<2x8x1xf32> to vector<2x8x8xf32>
    %44 = arith.subf %40, %43 : vector<2x8x8xf32>
    %45 = math.exp %44 : vector<2x8x8xf32>
    %cst_13 = arith.constant dense<0.000000e+00> : vector<2x8xf32>
    %46 = vector.multi_reduction <add>, %45, %cst_13 [2] : vector<2x8x8xf32> to vector<2x8xf32>
    %47 = vector.shape_cast %46 : vector<2x8xf32> to vector<2x8x1xf32>
    %48 = tpu.reciprocal %47 {approx = true} : vector<2x8x1xf32> -> vector<2x8x1xf32>
    %49 = vector.broadcast %48 : vector<2x8x1xf32> to vector<2x8x8xf32>
    %50 = arith.mulf %45, %49 : vector<2x8x8xf32>
    %51 = arith.truncf %50 : vector<2x8x8xf32> to vector<2x8x8xbf16>
    "tpu.trace_start"() <{level = 10 : i32, message = "bnm,bmd->bnd"}> : () -> ()
    %cst_14 = arith.constant dense<0.000000e+00> : vector<2x8x128xf32>
    %52 = tpu.matmul %51, %39, %cst_14 {dimension_numbers = #tpu.dot_dimension_numbers<[2], [1], [1], [2], [0, 0, 0, 1, 1, 2], [0], [0]>} : vector<2x8x8xbf16>, vector<2x8x128xbf16>, vector<2x8x128xf32> -> vector<2x8x128xf32>
    "tpu.trace_stop"() : () -> ()
    %53 = vector.shape_cast %52 : vector<2x8x128xf32> to vector<16x128xf32>
    %54 = arith.truncf %53 : vector<16x128xf32> to vector<16x128xbf16>
    %c128 = arith.constant 128 : index
    %c0_15 = arith.constant 0 : index
    %55 = vector.load %arg3[%c128, %c0_15] : memref<384x384xbf16, #tpu.memory_space<vmem>>, vector<128x384xbf16>
    %cst_16 = arith.constant dense<0.000000e+00> : vector<16x384xf32>
    %56 = tpu.matmul %54, %55, %cst_16 {dimension_numbers = #tpu.dot_dimension_numbers<[1], [0], [0], [1], [0, 0, 1, 1], [], []>} : vector<16x128xbf16>, vector<128x384xbf16>, vector<16x384xf32> -> vector<16x384xf32>
    %57 = arith.addf %30, %56 : vector<16x384xf32>
    %58 = vector.extract_strided_slice %4 {offsets = [0, 256], sizes = [16, 128], strides = [1, 1]} : vector<16x1152xf32> to vector<16x128xf32>
    %59 = arith.truncf %58 : vector<16x128xf32> to vector<16x128xbf16>
    %60 = vector.shape_cast %59 : vector<16x128xbf16> to vector<2x8x128xbf16>
    %61 = vector.extract_strided_slice %4 {offsets = [0, 640], sizes = [16, 128], strides = [1, 1]} : vector<16x1152xf32> to vector<16x128xf32>
    %62 = arith.truncf %61 : vector<16x128xf32> to vector<16x128xbf16>
    %63 = vector.shape_cast %62 : vector<16x128xbf16> to vector<2x8x128xbf16>
    %64 = vector.extract_strided_slice %4 {offsets = [0, 1024], sizes = [16, 128], strides = [1, 1]} : vector<16x1152xf32> to vector<16x128xf32>
    %65 = arith.truncf %64 : vector<16x128xf32> to vector<16x128xbf16>
    %66 = vector.shape_cast %65 : vector<16x128xbf16> to vector<2x8x128xbf16>
    "tpu.trace_start"() <{level = 10 : i32, message = "bnd,bmd->bnm"}> : () -> ()
    %cst_17 = arith.constant dense<0.000000e+00> : vector<2x8x8xf32>
    %67 = tpu.matmul %60, %63, %cst_17 {dimension_numbers = #tpu.dot_dimension_numbers<[2], [2], [1], [1], [0, 0, 0, 1, 1, 1], [0], [0]>} : vector<2x8x128xbf16>, vector<2x8x128xbf16>, vector<2x8x8xf32> -> vector<2x8x8xf32>
    "tpu.trace_stop"() : () -> ()
    %cst_18 = arith.constant dense<0xFF800000> : vector<2x8xf32>
    %68 = vector.multi_reduction <maximumf>, %67, %cst_18 [2] : vector<2x8x8xf32> to vector<2x8xf32>
    %69 = vector.shape_cast %68 : vector<2x8xf32> to vector<2x8x1xf32>
    %70 = vector.broadcast %69 : vector<2x8x1xf32> to vector<2x8x8xf32>
    %71 = arith.subf %67, %70 : vector<2x8x8xf32>
    %72 = math.exp %71 : vector<2x8x8xf32>
    %cst_19 = arith.constant dense<0.000000e+00> : vector<2x8xf32>
    %73 = vector.multi_reduction <add>, %72, %cst_19 [2] : vector<2x8x8xf32> to vector<2x8xf32>
    %74 = vector.shape_cast %73 : vector<2x8xf32> to vector<2x8x1xf32>
    %75 = tpu.reciprocal %74 {approx = true} : vector<2x8x1xf32> -> vector<2x8x1xf32>
    %76 = vector.broadcast %75 : vector<2x8x1xf32> to vector<2x8x8xf32>
    %77 = arith.mulf %72, %76 : vector<2x8x8xf32>
    %78 = arith.truncf %77 : vector<2x8x8xf32> to vector<2x8x8xbf16>
    "tpu.trace_start"() <{level = 10 : i32, message = "bnm,bmd->bnd"}> : () -> ()
    %cst_20 = arith.constant dense<0.000000e+00> : vector<2x8x128xf32>
    %79 = tpu.matmul %78, %66, %cst_20 {dimension_numbers = #tpu.dot_dimension_numbers<[2], [1], [1], [2], [0, 0, 0, 1, 1, 2], [0], [0]>} : vector<2x8x8xbf16>, vector<2x8x128xbf16>, vector<2x8x128xf32> -> vector<2x8x128xf32>
    "tpu.trace_stop"() : () -> ()
    %80 = vector.shape_cast %79 : vector<2x8x128xf32> to vector<16x128xf32>
    %81 = arith.truncf %80 : vector<16x128xf32> to vector<16x128xbf16>
    %c256 = arith.constant 256 : index
    %c0_21 = arith.constant 0 : index
    %82 = vector.load %arg3[%c256, %c0_21] : memref<384x384xbf16, #tpu.memory_space<vmem>>, vector<128x384xbf16>
    %cst_22 = arith.constant dense<0.000000e+00> : vector<16x384xf32>
    %83 = tpu.matmul %81, %82, %cst_22 {dimension_numbers = #tpu.dot_dimension_numbers<[1], [0], [0], [1], [0, 0, 1, 1], [], []>} : vector<16x128xbf16>, vector<128x384xbf16>, vector<16x384xf32> -> vector<16x384xf32>
    %84 = arith.addf %57, %83 : vector<16x384xf32>
    %c0_23 = arith.constant 0 : index
    %c0_24 = arith.constant 0 : index
    %85 = vector.load %arg4[%c0_23, %c0_24] : memref<1x384xf32, #tpu.memory_space<vmem>>, vector<1x384xf32>
    %86 = vector.broadcast %85 : vector<1x384xf32> to vector<16x384xf32>
    %87 = arith.addf %84, %86 : vector<16x384xf32>
    %88 = vector.shape_cast %87 : vector<16x384xf32> to vector<2x8x384xf32>
    %c0_25 = arith.constant 0 : index
    %c0_26 = arith.constant 0 : index
    %c0_27 = arith.constant 0 : index
    %89 = vector.load %arg5[%c0_25, %c0_26, %c0_27] : memref<2x8x384xf32, #tpu.memory_space<vmem>>, vector<2x8x384xf32>
    tpu.vector_store %arg5[%c0_25, %c0_26, %c0_27], %88 {strides = array<i32>} : memref<2x8x384xf32, #tpu.memory_space<vmem>>, vector<2x8x384xf32>,
    return
  }
  func.func @transform_0(%arg0: i32) -> (i32, i32, i32) {
    %c0_i32 = arith.constant 0 : i32
    %c0_i32_0 = arith.constant 0 : i32
    %c0_i32_1 = arith.constant 0 : i32
    return %arg0, %c0_i32, %c0_i32_0 : i32, i32, i32
  }
  func.func @transform_1(%arg0: i32) -> (i32, i32) {
    %c0_i32 = arith.constant 0 : i32
    %c0_i32_0 = arith.constant 0 : i32
    %c0_i32_1 = arith.constant 0 : i32
    return %c0_i32, %c0_i32_0 : i32, i32
  }
  func.func @transform_2(%arg0: i32) -> (i32, i32) {
    %c0_i32 = arith.constant 0 : i32
    %c0_i32_0 = arith.constant 0 : i32
    %c0_i32_1 = arith.constant 0 : i32
    return %c0_i32, %c0_i32_0 : i32, i32
  }
  func.func @transform_3(%arg0: i32) -> (i32, i32) {
    %c0_i32 = arith.constant 0 : i32
    %c0_i32_0 = arith.constant 0 : i32
    %c0_i32_1 = arith.constant 0 : i32
    return %c0_i32, %c0_i32_0 : i32, i32
  }
  func.func @transform_4(%arg0: i32) -> (i32, i32, i32) {
    %c0_i32 = arith.constant 0 : i32
    %c0_i32_0 = arith.constant 0 : i32
    %c0_i32_1 = arith.constant 0 : i32
    return %arg0, %c0_i32, %c0_i32_0 : i32, i32, i32
  }
}

</mosaic_0001>

<bundles_post_ra>
// kernel: mhsa_forward.1
= control target key start
LH: loop header
LB: loop body
LE: loop exit
PB: predicated region body
PF: predicated region fallthrough
CT: control target
= control target key end

     0   :  { %9 = vsyncpa [#allocation3], 0  ;;  %s4549_s0 = inlined_call_operand.hbm [shape: f32[2,8,384], index: 0, kind: input, shape index: {}]   ;;  %s4550_s1 = inlined_call_operand.hbm [shape: bf16[384,1152], index: 1, kind: input, shape index: {}]   ;;  %s4551_s2 = inlined_call_operand.hbm [shape: bf16[384,384], index: 2, kind: input, shape index: {}]   ;;  %s4552_s3 = inlined_call_operand.hbm [shape: f32[1,384], index: 3, kind: input, shape index: {}]   ;;  %s4553_s4 = inlined_call_operand.hbm [shape: f32[2,8,384], index: 4, kind: output, shape index: {}]  }
   0x1   :  { %10 = vsyncpa [#allocation6], 0 }
   0x2   :  { %11 = vsyncpa [#allocation9], 0  ;;  %s30_s17 = sshll.u32 %s4550_s1, 4  ;;  %s31_s17 = int_to_ptr.hbm [resolvable:$true] %s30_s17 }
   0x3   :  { %12 = vsyncpa [#allocation4], 0  ;;  %s4360_s18 = smov [#allocation5]   ;;  %s17_s22 = sshll.u32 %s4549_s0, 4  ;;  %s18_s22 = int_to_ptr.hbm [resolvable:$true] %s17_s22 }
   0x4   :  { %s32_s19 = sshll.u32 %s4360_s18, 4  ;;  %s4361_s23 = smov 576   ;;  %s33_s19 = int_to_ptr.vmem [resolvable:$true] %s32_s19 }
   0x5   :  { %s4362_s24 = smov 36   ;;  %s4363_s25 = smov [#allocation2]  }
   0x6   :  { %38 = dma.hbm_to_vmem [thread:$0]  %s31_s17, 27648, %s33_s19, [#allocation6], %s4361_s23, %s4361_s23, %s4362_s24  }
   0x7   :  { %s19_s26 = sshll.u32 %s4363_s25, 4  ;;  %s4364_s27 = smov 384   ;;  %s20_s26 = int_to_ptr.vmem [resolvable:$true] %s19_s26 }
   0x8   :  { %s4365_s28 = smov 24   ;;  %s43_s30 = sshll.u32 %s4551_s2, 4  ;;  %s44_s30 = int_to_ptr.hbm [resolvable:$true] %s43_s30 }
   0x9   :  { %25 = dma.hbm_to_vmem [thread:$0]  %s18_s22, 768, %s20_s26, [#allocation3], %s4364_s27, %s4364_s27, %s4365_s28  }
   0xa   :  { %s4366_s5 = smov [#allocation7]   ;;  %s57_s8 = sshll.u32 %s4552_s3, 4  ;;  %s58_s8 = int_to_ptr.hbm [resolvable:$true] %s57_s8 }
   0xb   :  { %s45_s0 = sshll.u32 %s4366_s5, 4  ;;  %s4367_s9 = smov 192   ;;  %s46_s0 = int_to_ptr.vmem [resolvable:$true] %s45_s0 }
   0xc   :  { %s4368_s10 = smov 12   ;;  %s4369_s11 = smov [#allocation8]  }
   0xd   :  { %51 = dma.hbm_to_vmem [thread:$0]  %s44_s30, 9216, %s46_s0, [#allocation6], %s4367_s9, %s4367_s9, %s4368_s10  }
   0xe   :  { %s59_s12 = sshll.u32 %s4369_s11, 4  ;;  %s60_s12 = int_to_ptr.vmem [resolvable:$true] %s59_s12 }
   0xf   :  { %62 = dma.hbm_to_vmem [thread:$0]  %s58_s8, 48, %s60_s12, [#allocation9]  }
  0x10   :  { %4352 = dma.done.wait [#allocation3], 768  }
  0x11   :  { %4353 = vsyncadd [#allocation3], 4294966528 }
  0x12   :  { %4354 = dma.done.wait [#allocation6], 36864  }
  0x13   :  { %4355 = vsyncadd [#allocation6], 4294930432 }
  0x14   :  { %4356 = dma.done.wait [#allocation9], 48  }
  0x15   :  { %4357 = vsyncadd [#allocation9], 4294967248  ;;  %v3005_v0 = vld [vmem:[#allocation5 + $0x1f8] sm:$0xf]  ;;  %v3976_v1 = vld [vmem:[#allocation5 + $0x218] sm:$0xf0] }
  0x16   :  { %v3293_v2 = vld [vmem:[#allocation5 + $0x438] sm:$0xf]  ;;  %v3006_v3 = vor.u32 %v3976_v1, %v3005_v0  ;;  %v4048_v4 = vld [vmem:[#allocation5 + $0x458] sm:$0xf0]  ;;  %v3007_v10 = vld [vmem:[#allocation5 + $0x21c] sm:$0xf0] }
  0x17   :  { %v3581_v5 = vld [vmem:[#allocation5 + $0x678] sm:$0xf]  ;;  %v4120_v6 = vld [vmem:[#allocation5 + $0x698] sm:$0xf0]  ;;  %v3294_v7 = vor.u32 %v4048_v4, %v3293_v2  ;;  %v2969_v11 = vld [vmem:[#allocation5 + $0x1b0] sm:$0xf] }
  0x18   :  { %v3582_v8 = vor.u32 %v4120_v6, %v3581_v5  ;;  %v3972_v9 = vld [vmem:[#allocation5 + $0x1fc] sm:$0xf]  ;;  %1433 = vmatpush.bf16.msra.mxu0 %v3006_v3  ;;  %v3967_v13 = vld [vmem:[#allocation5 + $0x1d0] sm:$0xf0]  ;;  %v3257_v14 = vld [vmem:[#allocation5 + $0x3f0] sm:$0xf] }
  0x19   :  { %v3010_v12 = vor.u32 %v3972_v9, %v3007_v10  ;;  %v4039_v15 = vld [vmem:[#allocation5 + $0x410] sm:$0xf0]  ;;  %1447 = vmatpush.bf16.msra.mxu1 %v3294_v7  ;;  %v2970_v16 = vor.u32 %v3967_v13, %v2969_v11  ;;  %v3545_v18 = vld [vmem:[#allocation5 + $0x630] sm:$0xf]  ;;  %v2971_v22 = vld [vmem:[#allocation5 + $0x1d4] sm:$0xf0] }
  0x1a   :  { %1461 = vmatpush.bf16.msra.mxu2 %v3582_v8  ;;  %v3258_v17 = vor.u32 %v4039_v15, %v3257_v14  ;;  %v4111_v19 = vld [vmem:[#allocation5 + $0x650] sm:$0xf0]  ;;  %v2933_v23 = vld [vmem:[#allocation5 + $0x168] sm:$0xf]  ;;  %v3958_v24 = vld [vmem:[#allocation5 + $0x188] sm:$0xf0] }
  0x1b   :  { %v3963_v20 = vld [vmem:[#allocation5 + $0x1b4] sm:$0xf]  ;;  %1475 = vmatpush.bf16.msra.mxu3 %v3010_v12  ;;  %v3546_v21 = vor.u32 %v4111_v19, %v3545_v18  ;;  %v3221_v26 = vld [vmem:[#allocation5 + $0x3a8] sm:$0xf]  ;;  %v4030_v27 = vld [vmem:[#allocation5 + $0x3c8] sm:$0xf0]  ;;  %v2934_v29 = vor.u32 %v3958_v24, %v2933_v23 }
  0x1c   :  { %v2974_v25 = vor.u32 %v3963_v20, %v2971_v22  ;;  %v3509_v28 = vld [vmem:[#allocation5 + $0x5e8] sm:$0xf]  ;;  %1434 = vmatpush.bf16.msra.mxu0 %v2970_v16  ;;  %v4102_v30 = vld [vmem:[#allocation5 + $0x608] sm:$0xf0]  ;;  %v2935_v32 = vld [vmem:[#allocation5 + $0x18c] sm:$0xf0]  ;;  %v3222_v33 = vor.u32 %v4030_v27, %v3221_v26 }
  0x1d   :  { %v3954_v31 = vld [vmem:[#allocation5 + $0x16c] sm:$0xf]  ;;  %1448 = vmatpush.bf16.msra.mxu1 %v3258_v17  ;;  %v3510_v34 = vor.u32 %v4102_v30, %v3509_v28  ;;  %v2897_v35 = vld [vmem:[#allocation5 + $0x120] sm:$0xf]  ;;  %v3949_v36 = vld [vmem:[#allocation5 + $0x140] sm:$0xf0] }
  0x1e   :  { %1462 = vmatpush.bf16.msra.mxu2 %v3546_v21  ;;  %v3185_v37 = vld [vmem:[#allocation5 + $0x360] sm:$0xf]  ;;  %v2938_v38 = vor.u32 %v3954_v31, %v2935_v32  ;;  %v4021_v39 = vld [vmem:[#allocation5 + $0x380] sm:$0xf0]  ;;  %v2899_v43 = vld [vmem:[#allocation5 + $0x144] sm:$0xf0]  ;;  %v2898_v44 = vor.u32 %v3949_v36, %v2897_v35 }
  0x1f   :  { %1476 = vmatpush.bf16.msra.mxu3 %v2974_v25  ;;  %v3473_v40 = vld [vmem:[#allocation5 + $0x5a0] sm:$0xf]  ;;  %v4093_v41 = vld [vmem:[#allocation5 + $0x5c0] sm:$0xf0]  ;;  %v3186_v45 = vor.u32 %v4021_v39, %v3185_v37  ;;  %v2861_v47 = vld [vmem:[#allocation5 + $0xd8] sm:$0xf] }
  0x20   :  { %v3945_v42 = vld [vmem:[#allocation5 + $0x124] sm:$0xf]  ;;  %1435 = vmatpush.bf16.msra.mxu0 %v2934_v29  ;;  %v3474_v46 = vor.u32 %v4093_v41, %v3473_v40  ;;  %v3940_v48 = vld [vmem:[#allocation5 + $0xf8] sm:$0xf0]  ;;  %v3149_v49 = vld [vmem:[#allocation5 + $0x318] sm:$0xf] }
  0x21   :  { %1449 = vmatpush.bf16.msra.mxu1 %v3222_v33  ;;  %v2902_v50 = vor.u32 %v3945_v42, %v2899_v43  ;;  %v4012_v51 = vld [vmem:[#allocation5 + $0x338] sm:$0xf0]  ;;  %v3437_v52 = vld [vmem:[#allocation5 + $0x558] sm:$0xf]  ;;  %v2863_v55 = vld [vmem:[#allocation5 + $0xfc] sm:$0xf0]  ;;  %v2862_v56 = vor.u32 %v3940_v48, %v2861_v47 }
  0x22   :  { %1463 = vmatpush.bf16.msra.mxu2 %v3510_v34  ;;  %v4084_v53 = vld [vmem:[#allocation5 + $0x578] sm:$0xf0]  ;;  %v3150_v57 = vor.u32 %v4012_v51, %v3149_v49  ;;  %v2825_v59 = vld [vmem:[#allocation5 + $0x90] sm:$0xf]  ;;  %v3931_v60 = vld [vmem:[#allocation5 + $0xb0] sm:$0xf0] }
  0x23   :  { %1477 = vmatpush.bf16.msra.mxu3 %v2938_v38  ;;  %v3936_v54 = vld [vmem:[#allocation5 + $0xdc] sm:$0xf]  ;;  %v3438_v58 = vor.u32 %v4084_v53, %v3437_v52  ;;  %v3113_v61 = vld [vmem:[#allocation5 + $0x2d0] sm:$0xf]  ;;  %v4003_v63 = vld [vmem:[#allocation5 + $0x2f0] sm:$0xf0]  ;;  %v2826_v4 = vor.u32 %v3931_v60, %v2825_v59 }
  0x24   :  { %1436 = vmatpush.bf16.msra.mxu0 %v2898_v44  ;;  %v2866_v62 = vor.u32 %v3936_v54, %v2863_v55  ;;  %v3401_v0 = vld [vmem:[#allocation5 + $0x510] sm:$0xf]  ;;  %v4075_v1 = vld [vmem:[#allocation5 + $0x530] sm:$0xf0]  ;;  %v2827_v3 = vld [vmem:[#allocation5 + $0xb4] sm:$0xf0]  ;;  %v3114_v5 = vor.u32 %v4003_v63, %v3113_v61 }
  0x25   :  { %1450 = vmatpush.bf16.msra.mxu1 %v3186_v45  ;;  %v3927_v2 = vld [vmem:[#allocation5 + $0x94] sm:$0xf]  ;;  %v3402_v6 = vor.u32 %v4075_v1, %v3401_v0  ;;  %v2789_v7 = vld [vmem:[#allocation5 + $0x48] sm:$0xf]  ;;  %v3922_v8 = vld [vmem:[#allocation5 + $0x68] sm:$0xf0] }
  0x26   :  { %1464 = vmatpush.bf16.msra.mxu2 %v3474_v46  ;;  %v3077_v9 = vld [vmem:[#allocation5 + $0x288] sm:$0xf]  ;;  %v2830_v10 = vor.u32 %v3927_v2, %v2827_v3  ;;  %v3994_v11 = vld [vmem:[#allocation5 + $0x2a8] sm:$0xf0]  ;;  %v2791_v15 = vld [vmem:[#allocation5 + $0x6c] sm:$0xf0]  ;;  %v2790_v16 = vor.u32 %v3922_v8, %v2789_v7 }
  0x27   :  { %1478 = vmatpush.bf16.msra.mxu3 %v2902_v50  ;;  %v3365_v12 = vld [vmem:[#allocation5 + $0x4c8] sm:$0xf]  ;;  %v4066_v13 = vld [vmem:[#allocation5 + $0x4e8] sm:$0xf0]  ;;  %v2753_v17 = vld [vmem:[#allocation5] sm:$0xf]  ;;  %v3078_v19 = vor.u32 %v3994_v11, %v3077_v9 }
  0x28   :  { %1437 = vmatpush.bf16.msra.mxu0 %v2862_v56  ;;  %v3918_v14 = vld [vmem:[#allocation5 + $0x4c] sm:$0xf]  ;;  %v3913_v18 = vld [vmem:[#allocation5 + $0x20] sm:$0xf0]  ;;  %v3366_v20 = vor.u32 %v4066_v13, %v3365_v12  ;;  %v3041_v21 = vld [vmem:[#allocation5 + $0x240] sm:$0xf] }
  0x29   :  { %1451 = vmatpush.bf16.msra.mxu1 %v3150_v57  ;;  %v3985_v22 = vld [vmem:[#allocation5 + $0x260] sm:$0xf0]  ;;  %v3329_v23 = vld [vmem:[#allocation5 + $0x480] sm:$0xf]  ;;  %v2794_v24 = vor.u32 %v3918_v14, %v2791_v15  ;;  %v2755_v27 = vld [vmem:[#allocation5 + $0x24] sm:$0xf0]  ;;  %v2754_v31 = vor.u32 %v3913_v18, %v2753_v17 }
  0x2a   :  { %1465 = vmatpush.bf16.msra.mxu2 %v3438_v58  ;;  %v4057_v25 = vld [vmem:[#allocation5 + $0x4a0] sm:$0xf0]  ;;  %v4044_v28 = vld [vmem:[#allocation5 + $0x43c] sm:$0xf]  ;;  %v3295_v29 = vld [vmem:[#allocation5 + $0x45c] sm:$0xf0]  ;;  %v3042_v35 = vor.u32 %v3985_v22, %v3041_v21 }
  0x2b   :  { %1479 = vmatpush.bf16.msra.mxu3 %v2866_v62  ;;  %v3909_v26 = vld [vmem:[#allocation5 + $0x4] sm:$0xf]  ;;  %v4116_v30 = vld [vmem:[#allocation5 + $0x67c] sm:$0xf]  ;;  %v3583_v32 = vld [vmem:[#allocation5 + $0x69c] sm:$0xf0]  ;;  %v3330_v36 = vor.u32 %v4057_v25, %v3329_v23  ;;  %v3298_v40 = vor.u32 %v4044_v28, %v3295_v29 }
  0x2c   :  { %1438 = vmatpush.bf16.msra.mxu0 %v2826_v4  ;;  %v3013_v33 = vld [vmem:[#allocation5 + $0x200] sm:$0xf]  ;;  %v3977_v34 = vld [vmem:[#allocation5 + $0x220] sm:$0xf0]  ;;  %v2758_v39 = vor.u32 %v3909_v26, %v2755_v27  ;;  %v4035_v41 = vld [vmem:[#allocation5 + $0x3f4] sm:$0xf]  ;;  %v3586_v42 = vor.u32 %v4116_v30, %v3583_v32 }
  0x2d   :  { %1452 = vmatpush.bf16.msra.mxu1 %v3114_v5  ;;  %v3301_v37 = vld [vmem:[#allocation5 + $0x440] sm:$0xf]  ;;  %v4049_v38 = vld [vmem:[#allocation5 + $0x460] sm:$0xf0]  ;;  %v3014_v43 = vor.u32 %v3977_v34, %v3013_v33  ;;  %v3259_v44 = vld [vmem:[#allocation5 + $0x414] sm:$0xf0] }
  0x2e   :  { %1466 = vmatpush.bf16.msra.mxu2 %v3402_v6  ;;  %v4107_v45 = vld [vmem:[#allocation5 + $0x634] sm:$0xf]  ;;  %v3547_v46 = vld [vmem:[#allocation5 + $0x654] sm:$0xf0]  ;;  %v3302_v47 = vor.u32 %v4049_v38, %v3301_v37  ;;  %v3968_v49 = vld [vmem:[#allocation5 + $0x1d8] sm:$0xf0]  ;;  %v3262_v54 = vor.u32 %v4035_v41, %v3259_v44 }
  0x2f   :  { %1480 = vmatpush.bf16.msra.mxu3 %v2830_v10  ;;  %v2977_v48 = vld [vmem:[#allocation5 + $0x1b8] sm:$0xf]  ;;  %v4040_v51 = vld [vmem:[#allocation5 + $0x418] sm:$0xf0]  ;;  %v80_v52 = vld [vmem:[#allocation2] sm:$0xff]  ;;  %v3550_v58 = vor.u32 %v4107_v45, %v3547_v46  ;;  %vm1871_vm0 = vcmask 1043456  }
  0x30   :  { %1439 = vmatpush.bf16.msra.mxu0 %v2790_v16  ;;  %v3265_v50 = vld [vmem:[#allocation5 + $0x3f8] sm:$0xf]  ;;  %v83_v53 = vld [vmem:[#allocation2 + $0x18] sm:$0xff]  ;;  %v3223_v56 = vld [vmem:[#allocation5 + $0x3cc] sm:$0xf0]  ;;  %v2978_v59 = vor.u32 %v3968_v49, %v2977_v48  ;;  %vm1843_vm1 = vcmask 64512  }
  0x31   :  { %1453 = vmatpush.bf16.msra.mxu1 %v3078_v19  ;;  %v4026_v55 = vld [vmem:[#allocation5 + $0x3ac] sm:$0xf]  ;;  %v4411_v57 = vpack.c.bf16 %v83_v53, %v80_v52  ;;  %v3511_v61 = vld [vmem:[#allocation5 + $0x60c] sm:$0xf0]  ;;  %v3266_v63 = vor.u32 %v4040_v51, %v3265_v50  ;;  %v3959_v0 = vld [vmem:[#allocation5 + $0x190] sm:$0xf0] }
  0x32   :  { %1467 = vmatpush.bf16.msra.mxu2 %v3366_v20  ;;  %v4098_v60 = vld [vmem:[#allocation5 + $0x5ec] sm:$0xf]  ;;  %v2941_v62 = vld [vmem:[#allocation5 + $0x170] sm:$0xf]  ;;  %v81_v1 = vld [vmem:[#allocation2 + $0x8] sm:$0xff]  ;;  %v3226_v6 = vor.u32 %v4026_v55, %v3223_v56  ;;  %s4370_s2 = smov [#allocation10]  }
  0x33   :  { %1481 = vmatpush.bf16.msra.mxu3 %v2794_v24  ;;  %v84_v2 = vld [vmem:[#allocation2 + $0x20] sm:$0xff]  ;;  %v4017_v7 = vld [vmem:[#allocation5 + $0x364] sm:$0xf]  ;;  %v3187_v8 = vld [vmem:[#allocation5 + $0x384] sm:$0xf0]  ;;  %v3514_v9 = vor.u32 %v4098_v60, %v3511_v61  ;;  %v2942_v10 = vor.u32 %v3959_v0, %v2941_v62  ;;  %s2734_s3 = sshll.u32 %s4370_s2, 4  ;;  %s2735_s3 = int_to_ptr.vmem [resolvable:$true] %s2734_s3 }
  0x34   :  { %1440 = vmatpush.bf16.msra.mxu0 %v2754_v31  ;;  %v3229_v3 = vld [vmem:[#allocation5 + $0x3b0] sm:$0xf]  ;;  %v4031_v4 = vld [vmem:[#allocation5 + $0x3d0] sm:$0xf0]  ;;  %v4414_v5 = vpack.c.bf16 %v84_v2, %v81_v1  ;;  %v4089_v11 = vld [vmem:[#allocation5 + $0x5a4] sm:$0xf]  ;;  %v3190_v21 = vor.u32 %v4017_v7, %v3187_v8 }
  0x35   :  { %1454 = vmatpush.bf16.msra.mxu1 %v3042_v35  ;;  %v3475_v12 = vld [vmem:[#allocation5 + $0x5c4] sm:$0xf0]  ;;  %v82_v13 = vld [vmem:[#allocation2 + $0x10] sm:$0xff]  ;;  %v3230_v14 = vor.u32 %v4031_v4, %v3229_v3  ;;  %v3950_v16 = vld [vmem:[#allocation5 + $0x148] sm:$0xf0]  ;;  %s2736_s15 = sshll.u32 %s4553_s4, 4  ;;  %s2737_s15 = int_to_ptr.hbm [resolvable:$true] %s2736_s15 }
  0x36   :  { %1468 = vmatpush.bf16.msra.mxu2 %v3330_v36  ;;  %v2905_v15 = vld [vmem:[#allocation5 + $0x128] sm:$0xf]  ;;  %v85_v17 = vld [vmem:[#allocation2 + $0x28] sm:$0xff]  ;;  %v4022_v19 = vld [vmem:[#allocation5 + $0x388] sm:$0xf0]  ;;  %v3478_v22 = vor.u32 %v4089_v11, %v3475_v12 }
  0x37   :  { %1482 = vmatpush.bf16.msra.mxu3 %v2758_v39  ;;  %1441 = vmatmul.bf16.vlgmr.msra.gmra.mxu0 %v4411_v57  ;;  %v3193_v18 = vld [vmem:[#allocation5 + $0x368] sm:$0xf]  ;;  %v4418_v20 = vpack.c.bf16 %v85_v17, %v82_v13  ;;  %v2906_v23 = vor.u32 %v3950_v16, %v2905_v15  ;;  %v4008_v24 = vld [vmem:[#allocation5 + $0x31c] sm:$0xf]  ;;  %v3151_v25 = vld [vmem:[#allocation5 + $0x33c] sm:$0xf0] }
  0x38   :  { %1489 = vmatpush.bf16.msrb.mxu0 %v3298_v40  ;;  %1455 = vmatmul.bf16.vlgmr.msra.gmra.mxu1 %v4414_v5  ;;  %v4080_v26 = vld [vmem:[#allocation5 + $0x55c] sm:$0xf]  ;;  %v3194_v27 = vor.u32 %v4022_v19, %v3193_v18  ;;  %v3439_v28 = vld [vmem:[#allocation5 + $0x57c] sm:$0xf0]  ;;  %v3941_v30 = vld [vmem:[#allocation5 + $0x100] sm:$0xf0]  ;;  %v3154_v33 = vor.u32 %v4008_v24, %v3151_v25 }
  0x39   :  { %1503 = vmatpush.bf16.msrb.mxu1 %v3586_v42  ;;  %v2869_v29 = vld [vmem:[#allocation5 + $0xe0] sm:$0xf]  ;;  %1469 = vmatmul.bf16.vlgmr.msra.gmra.mxu2 %v4418_v20  ;;  %v4013_v32 = vld [vmem:[#allocation5 + $0x340] sm:$0xf0]  ;;  %v3442_v34 = vor.u32 %v4080_v26, %v3439_v28  ;;  %v3999_v36 = vld [vmem:[#allocation5 + $0x2d4] sm:$0xf] }
  0x3a   :  { %1517 = vmatpush.bf16.msrb.mxu2 %v3014_v43  ;;  %1483 = vmatmul.bf16.vlgmr.msra.gmra.mxu3 %v4411_v57  ;;  %v3157_v31 = vld [vmem:[#allocation5 + $0x320] sm:$0xf]  ;;  %v2870_v35 = vor.u32 %v3941_v30, %v2869_v29  ;;  %v3115_v37 = vld [vmem:[#allocation5 + $0x2f4] sm:$0xf0]  ;;  %v4071_v38 = vld [vmem:[#allocation5 + $0x514] sm:$0xf] }
  0x3b   :  { %1531 = vmatpush.bf16.msrb.mxu3 %v3302_v47  ;;  %v3158_v39 = vor.u32 %v4013_v32, %v3157_v31  ;;  %v3403_v40 = vld [vmem:[#allocation5 + $0x534] sm:$0xf0]  ;;  %v3932_v42 = vld [vmem:[#allocation5 + $0xb8] sm:$0xf0]  ;;  %v3118_v45 = vor.u32 %v3999_v36, %v3115_v37  ;;  %v3990_v48 = vld [vmem:[#allocation5 + $0x28c] sm:$0xf] }
  0x3c   :  { %1490 = vmatpush.bf16.msrb.mxu0 %v3262_v54  ;;  %v2833_v41 = vld [vmem:[#allocation5 + $0x98] sm:$0xf]  ;;  %v4004_v44 = vld [vmem:[#allocation5 + $0x2f8] sm:$0xf0]  ;;  %v3406_v46 = vor.u32 %v4071_v38, %v3403_v40  ;;  %v3079_v49 = vld [vmem:[#allocation5 + $0x2ac] sm:$0xf0] }
  0x3d   :  { %1504 = vmatpush.bf16.msrb.mxu1 %v3550_v58  ;;  %v3121_v43 = vld [vmem:[#allocation5 + $0x2d8] sm:$0xf]  ;;  %v2834_v47 = vor.u32 %v3932_v42, %v2833_v41  ;;  %v4062_v50 = vld [vmem:[#allocation5 + $0x4cc] sm:$0xf]  ;;  %v3367_v52 = vld [vmem:[#allocation5 + $0x4ec] sm:$0xf0]  ;;  %v3082_v58 = vor.u32 %v3990_v48, %v3079_v49 }
  0x3e   :  { %1518 = vmatpush.bf16.msrb.mxu2 %v2978_v59  ;;  %v3122_v51 = vor.u32 %v4004_v44, %v3121_v43  ;;  %v2797_v53 = vld [vmem:[#allocation5 + $0x50] sm:$0xf]  ;;  %v3923_v54 = vld [vmem:[#allocation5 + $0x70] sm:$0xf0]  ;;  %v3981_v59 = vld [vmem:[#allocation5 + $0x244] sm:$0xf]  ;;  %v3370_v61 = vor.u32 %v4062_v50, %v3367_v52 }
  0x3f   :  { %1532 = vmatpush.bf16.msrb.mxu3 %v3266_v63  ;;  %v3085_v55 = vld [vmem:[#allocation5 + $0x290] sm:$0xf]  ;;  %v3995_v56 = vld [vmem:[#allocation5 + $0x2b0] sm:$0xf0]  ;;  %v3043_v60 = vld [vmem:[#allocation5 + $0x264] sm:$0xf0]  ;;  %v2798_v62 = vor.u32 %v3923_v54, %v2797_v53 }
  0x40   :  { %1491 = vmatpush.bf16.msrb.mxu0 %v3226_v6  ;;  %v4053_v63 = vld [vmem:[#allocation5 + $0x484] sm:$0xf]  ;;  %v3331_v0 = vld [vmem:[#allocation5 + $0x4a4] sm:$0xf0]  ;;  %v3086_v2 = vor.u32 %v3995_v56, %v3085_v55  ;;  %v3914_v3 = vld [vmem:[#allocation5 + $0x28] sm:$0xf0] }
  0x41   :  { %1505 = vmatpush.bf16.msrb.mxu1 %v3514_v9  ;;  %v2761_v1 = vld [vmem:[#allocation5 + $0x8] sm:$0xf]  ;;  %v3986_v6 = vld [vmem:[#allocation5 + $0x268] sm:$0xf0]  ;;  %v3589_v7 = vld [vmem:[#allocation5 + $0x680] sm:$0xf] }
  0x42   :  { %1519 = vmatpush.bf16.msrb.mxu2 %v2942_v10  ;;  %v3049_v4 = vld [vmem:[#allocation5 + $0x248] sm:$0xf]  ;;  %v4121_v8 = vld [vmem:[#allocation5 + $0x6a0] sm:$0xf0]  ;;  %v3046_v10 = vor.u32 %v3981_v59, %v3043_v60  ;;  %v2762_v15 = vor.u32 %v3914_v3, %v2761_v1  ;;  %v4112_v24 = vld [vmem:[#allocation5 + $0x658] sm:$0xf0] }
  0x43   :  { %1533 = vmatpush.bf16.msrb.mxu3 %v3230_v14  ;;  %v3973_v9 = vld [vmem:[#allocation5 + $0x204] sm:$0xf]  ;;  %v3015_v11 = vld [vmem:[#allocation5 + $0x224] sm:$0xf0]  ;;  %v3334_v14 = vor.u32 %v4053_v63, %v3331_v0  ;;  %v3050_v18 = vor.u32 %v3986_v6, %v3049_v4  ;;  %v3590_v19 = vor.u32 %v4121_v8, %v3589_v7  ;;  %v3964_v25 = vld [vmem:[#allocation5 + $0x1bc] sm:$0xf] }
  0x44   :  { %1492 = vmatpush.bf16.msrb.mxu0 %v3190_v21  ;;  %v4045_v12 = vld [vmem:[#allocation5 + $0x444] sm:$0xf]  ;;  %v3303_v13 = vld [vmem:[#allocation5 + $0x464] sm:$0xf0]  ;;  %v3018_v21 = vor.u32 %v3973_v9, %v3015_v11  ;;  %v4036_v28 = vld [vmem:[#allocation5 + $0x3fc] sm:$0xf] }
  0x45   :  { %1506 = vmatpush.bf16.msrb.mxu1 %v3478_v22  ;;  %v4117_v16 = vld [vmem:[#allocation5 + $0x684] sm:$0xf]  ;;  %v3591_v17 = vld [vmem:[#allocation5 + $0x6a4] sm:$0xf0]  ;;  %v3306_v22 = vor.u32 %v4045_v12, %v3303_v13  ;;  %v3267_v29 = vld [vmem:[#allocation5 + $0x41c] sm:$0xf0] }
  0x46   :  { %1520 = vmatpush.bf16.msrb.mxu2 %v2906_v23  ;;  %v3553_v23 = vld [vmem:[#allocation5 + $0x638] sm:$0xf]  ;;  %v3594_v26 = vor.u32 %v4117_v16, %v3591_v17  ;;  %v4108_v30 = vld [vmem:[#allocation5 + $0x63c] sm:$0xf]  ;;  %v3555_v31 = vld [vmem:[#allocation5 + $0x65c] sm:$0xf0] }
  0x47   :  { %1534 = vmatpush.bf16.msrb.mxu3 %v3194_v27  ;;  %v2979_v27 = vld [vmem:[#allocation5 + $0x1dc] sm:$0xf0]  ;;  %v3554_v32 = vor.u32 %v4112_v24, %v3553_v23  ;;  %v4103_v36 = vld [vmem:[#allocation5 + $0x610] sm:$0xf0]  ;;  %v3558_v38 = vor.u32 %v4108_v30, %v3555_v31  ;;  %v3231_v41 = vld [vmem:[#allocation5 + $0x3d4] sm:$0xf0] }
  0x48   :  { %1493 = vmatpush.bf16.msrb.mxu0 %v3154_v33  ;;  %v2982_v33 = vor.u32 %v3964_v25, %v2979_v27  ;;  %v3955_v37 = vld [vmem:[#allocation5 + $0x174] sm:$0xf]  ;;  %v3519_v43 = vld [vmem:[#allocation5 + $0x614] sm:$0xf0]  ;;  %v4094_v48 = vld [vmem:[#allocation5 + $0x5c8] sm:$0xf0] }
  0x49   :  { %1507 = vmatpush.bf16.msrb.mxu1 %v3442_v34  ;;  %v3270_v34 = vor.u32 %v4036_v28, %v3267_v29  ;;  %v4027_v40 = vld [vmem:[#allocation5 + $0x3b4] sm:$0xf]  ;;  %v3946_v49 = vld [vmem:[#allocation5 + $0x12c] sm:$0xf]  ;;  %v3195_v53 = vld [vmem:[#allocation5 + $0x38c] sm:$0xf0] }
  0x4a   :  { %1521 = vmatpush.bf16.msrb.mxu2 %v2870_v35  ;;  %v3517_v35 = vld [vmem:[#allocation5 + $0x5f0] sm:$0xf]  ;;  %v4099_v42 = vld [vmem:[#allocation5 + $0x5f4] sm:$0xf]  ;;  %v4018_v52 = vld [vmem:[#allocation5 + $0x36c] sm:$0xf] }
  0x4b   :  { %1535 = vmatpush.bf16.msrb.mxu3 %v3158_v39  ;;  %v2943_v39 = vld [vmem:[#allocation5 + $0x194] sm:$0xf0]  ;;  %v3518_v44 = vor.u32 %v4103_v36, %v3517_v35  ;;  %v3522_v50 = vor.u32 %v4099_v42, %v3519_v43  ;;  %v4090_v54 = vld [vmem:[#allocation5 + $0x5ac] sm:$0xf]  ;;  %v3483_v55 = vld [vmem:[#allocation5 + $0x5cc] sm:$0xf0]  ;;  %v3198_v59 = vor.u32 %v4018_v52, %v3195_v53 }
  0x4c   :  { %1494 = vmatpush.bf16.msrb.mxu0 %v3118_v45  ;;  %v2946_v45 = vor.u32 %v3955_v37, %v2943_v39  ;;  %v3445_v60 = vld [vmem:[#allocation5 + $0x560] sm:$0xf]  ;;  %v3486_v63 = vor.u32 %v4090_v54, %v3483_v55  ;;  %v2871_v0 = vld [vmem:[#allocation5 + $0x104] sm:$0xf0]  ;;  %v4009_v1 = vld [vmem:[#allocation5 + $0x324] sm:$0xf] }
  0x4d   :  { %1508 = vmatpush.bf16.msrb.mxu1 %v3406_v46  ;;  %v3234_v46 = vor.u32 %v4027_v40, %v3231_v41  ;;  %v4081_v3 = vld [vmem:[#allocation5 + $0x564] sm:$0xf]  ;;  %v3447_v4 = vld [vmem:[#allocation5 + $0x584] sm:$0xf0]  ;;  %v3409_v9 = vld [vmem:[#allocation5 + $0x518] sm:$0xf] }
  0x4e   :  { %1522 = vmatpush.bf16.msrb.mxu2 %v2834_v47  ;;  %v3481_v47 = vld [vmem:[#allocation5 + $0x5a8] sm:$0xf]  ;;  %v3928_v11 = vld [vmem:[#allocation5 + $0x9c] sm:$0xf]  ;;  %v3450_v12 = vor.u32 %v4081_v3, %v3447_v4  ;;  %v2835_v13 = vld [vmem:[#allocation5 + $0xbc] sm:$0xf0] }
  0x4f   :  { %1536 = vmatpush.bf16.msrb.mxu3 %v3122_v51  ;;  %v2907_v51 = vld [vmem:[#allocation5 + $0x14c] sm:$0xf0]  ;;  %v3482_v56 = vor.u32 %v4094_v48, %v3481_v47  ;;  %v4072_v16 = vld [vmem:[#allocation5 + $0x51c] sm:$0xf]  ;;  %v3411_v17 = vld [vmem:[#allocation5 + $0x53c] sm:$0xf0] }
  0x50   :  { %1495 = vmatpush.bf16.msrb.mxu0 %v3082_v58  ;;  %v2910_v58 = vor.u32 %v3946_v49, %v2907_v51  ;;  %v4067_v23 = vld [vmem:[#allocation5 + $0x4f0] sm:$0xf0]  ;;  %v3414_v25 = vor.u32 %v4072_v16, %v3411_v17  ;;  %v3087_v28 = vld [vmem:[#allocation5 + $0x2b4] sm:$0xf0]  ;;  %v3910_v36 = vld [vmem:[#allocation5 + $0xc] sm:$0xf] }
  0x51   :  { %1509 = vmatpush.bf16.msrb.mxu1 %v3370_v61  ;;  %v4085_v61 = vld [vmem:[#allocation5 + $0x580] sm:$0xf0]  ;;  %v3919_v24 = vld [vmem:[#allocation5 + $0x54] sm:$0xf]  ;;  %v3375_v30 = vld [vmem:[#allocation5 + $0x4f4] sm:$0xf0] }
  0x52   :  { %1523 = vmatpush.bf16.msrb.mxu2 %v2798_v62  ;;  %v3937_v62 = vld [vmem:[#allocation5 + $0xe4] sm:$0xf]  ;;  %v3446_v6 = vor.u32 %v4085_v61, %v3445_v60  ;;  %v3991_v27 = vld [vmem:[#allocation5 + $0x294] sm:$0xf]  ;;  %v2763_v37 = vld [vmem:[#allocation5 + $0x2c] sm:$0xf0] }
  0x53   :  { %1537 = vmatpush.bf16.msrb.mxu3 %v3086_v2  ;;  %v3159_v2 = vld [vmem:[#allocation5 + $0x344] sm:$0xf0]  ;;  %v2874_v7 = vor.u32 %v3937_v62, %v2871_v0  ;;  %v4063_v29 = vld [vmem:[#allocation5 + $0x4d4] sm:$0xf]  ;;  %v3090_v35 = vor.u32 %v3991_v27, %v3087_v28  ;;  %v3051_v40 = vld [vmem:[#allocation5 + $0x26c] sm:$0xf0] }
  0x54   :  { %1496 = vmatpush.bf16.msrb.mxu0 %v3046_v10  ;;  %v3162_v8 = vor.u32 %v4009_v1, %v3159_v2  ;;  %v4076_v10 = vld [vmem:[#allocation5 + $0x538] sm:$0xf0]  ;;  %v3378_v39 = vor.u32 %v4063_v29, %v3375_v30  ;;  %v4054_v41 = vld [vmem:[#allocation5 + $0x48c] sm:$0xf]  ;;  %v3339_v42 = vld [vmem:[#allocation5 + $0x4ac] sm:$0xf0] }
  0x55   :  { %1510 = vmatpush.bf16.msrb.mxu1 %v3334_v14  ;;  %v4000_v14 = vld [vmem:[#allocation5 + $0x2dc] sm:$0xf]  ;;  %v3021_v43 = vld [vmem:[#allocation5 + $0x208] sm:$0xf]  ;;  %v4050_v47 = vld [vmem:[#allocation5 + $0x468] sm:$0xf0]  ;;  %v3342_v52 = vor.u32 %v4054_v41, %v3339_v42 }
  0x56   :  { %1524 = vmatpush.bf16.msrb.mxu2 %v2762_v15  ;;  %v3123_v15 = vld [vmem:[#allocation5 + $0x2fc] sm:$0xf0]  ;;  %v3597_v48 = vld [vmem:[#allocation5 + $0x688] sm:$0xf]  ;;  %v4122_v49 = vld [vmem:[#allocation5 + $0x6a8] sm:$0xf0] }
  0x57   :  { %1538 = vmatpush.bf16.msrb.mxu3 %v3050_v18  ;;  %1497 = vmatmul.bf16.vlgmr.msrb.gmra.mxu0 %v4414_v5  ;;  %v3410_v18 = vor.u32 %v4076_v10, %v3409_v9  ;;  %v3598_v55 = vor.u32 %v4122_v49, %v3597_v48  ;;  %v4041_v60 = vld [vmem:[#allocation5 + $0x420] sm:$0xf0]  ;;  %v3561_v61 = vld [vmem:[#allocation5 + $0x640] sm:$0xf]  ;;  %v3960_v1 = vld [vmem:[#allocation5 + $0x198] sm:$0xf0] }
  0x58   :  { %1545 = vmatpush.bf16.msra.mxu0 %v3590_v19  ;;  %1511 = vmatmul.bf16.vlgmr.msrb.gmra.mxu1 %v4418_v20  ;;  %v2838_v19 = vor.u32 %v3928_v11, %v2835_v13  ;;  %v4113_v62 = vld [vmem:[#allocation5 + $0x660] sm:$0xf0]  ;;  %v3974_v2 = vld [vmem:[#allocation5 + $0x20c] sm:$0xf]  ;;  %v3023_v3 = vld [vmem:[#allocation5 + $0x22c] sm:$0xf0] }
  0x59   :  { %1559 = vmatpush.bf16.msra.mxu1 %v3018_v21  ;;  %1525 = vmatmul.bf16.vlgmr.msrb.gmra.mxu2 %v4411_v57  ;;  %v3126_v21 = vor.u32 %v4000_v14, %v3123_v15  ;;  %v3965_v9 = vld [vmem:[#allocation5 + $0x1c4] sm:$0xf]  ;;  %v2987_v10 = vld [vmem:[#allocation5 + $0x1e4] sm:$0xf0]  ;;  %v4032_v11 = vld [vmem:[#allocation5 + $0x3d8] sm:$0xf0] }
  0x5a   :  { %1573 = vmatpush.bf16.msra.mxu2 %v3306_v22  ;;  %1539 = vmatmul.bf16.vlgmr.msrb.gmra.mxu3 %v4414_v5  ;;  %v3373_v22 = vld [vmem:[#allocation5 + $0x4d0] sm:$0xf]  ;;  %v4104_v13 = vld [vmem:[#allocation5 + $0x618] sm:$0xf0]  ;;  %v3951_v16 = vld [vmem:[#allocation5 + $0x150] sm:$0xf0]  ;;  %v2990_v17 = vor.u32 %v3965_v9, %v2987_v10 }
  0x5b   :  { %1587 = vmatpush.bf16.msra.mxu3 %v3594_v26  ;;  %v2799_v26 = vld [vmem:[#allocation5 + $0x74] sm:$0xf0]  ;;  %v3374_v31 = vor.u32 %v4067_v23, %v3373_v22  ;;  %v2913_v15 = vld [vmem:[#allocation5 + $0x130] sm:$0xf]  ;;  %v3956_v22 = vld [vmem:[#allocation5 + $0x17c] sm:$0xf] }
  0x5c   :  { %1546 = vmatpush.bf16.msra.mxu0 %v3554_v32  ;;  %v3337_v32 = vld [vmem:[#allocation5 + $0x488] sm:$0xf]  ;;  %v2951_v23 = vld [vmem:[#allocation5 + $0x19c] sm:$0xf0]  ;;  %v2914_v27 = vor.u32 %v3951_v16, %v2913_v15  ;;  %v3942_v29 = vld [vmem:[#allocation5 + $0x108] sm:$0xf0] }
  0x5d   :  { %1560 = vmatpush.bf16.msra.mxu1 %v2982_v33  ;;  %v4058_v33 = vld [vmem:[#allocation5 + $0x4a8] sm:$0xf0]  ;;  %v2877_v28 = vld [vmem:[#allocation5 + $0xe8] sm:$0xf]  ;;  %v2954_v30 = vor.u32 %v3956_v22, %v2951_v23  ;;  %v3933_v41 = vld [vmem:[#allocation5 + $0xc0] sm:$0xf0] }
  0x5e   :  { %1574 = vmatpush.bf16.msra.mxu2 %v3270_v34  ;;  %v2802_v34 = vor.u32 %v3919_v24, %v2799_v26  ;;  %v4023_v24 = vld [vmem:[#allocation5 + $0x390] sm:$0xf0]  ;;  %v4005_v48 = vld [vmem:[#allocation5 + $0x300] sm:$0xf0]  ;;  %v3417_v49 = vld [vmem:[#allocation5 + $0x520] sm:$0xf] }
  0x5f   :  { %1588 = vmatpush.bf16.msra.mxu3 %v3558_v38  ;;  %v3982_v38 = vld [vmem:[#allocation5 + $0x24c] sm:$0xf]  ;;  %v4095_v26 = vld [vmem:[#allocation5 + $0x5d0] sm:$0xf0]  ;;  %v3920_v9 = vld [vmem:[#allocation5 + $0x5c] sm:$0xf] }
  0x60   :  { %1547 = vmatpush.bf16.msra.mxu0 %v3518_v44  ;;  %v3978_v44 = vld [vmem:[#allocation5 + $0x228] sm:$0xf0]  ;;  %v3054_v51 = vor.u32 %v3982_v38, %v3051_v40  ;;  %v2841_v40 = vld [vmem:[#allocation5 + $0xa0] sm:$0xf]  ;;  %v3029_v15 = vld [vmem:[#allocation5 + $0x210] sm:$0xf] }
  0x61   :  { %1561 = vmatpush.bf16.msra.mxu1 %v2946_v45  ;;  %v3309_v45 = vld [vmem:[#allocation5 + $0x448] sm:$0xf]  ;;  %v3022_v53 = vor.u32 %v3978_v44, %v3021_v43  ;;  %v4086_v38 = vld [vmem:[#allocation5 + $0x588] sm:$0xf0]  ;;  %v2807_v10 = vld [vmem:[#allocation5 + $0x7c] sm:$0xf0] }
  0x62   :  { %1575 = vmatpush.bf16.msra.mxu2 %v3234_v46  ;;  %v3338_v46 = vor.u32 %v4058_v33, %v3337_v32  ;;  %v3310_v54 = vor.u32 %v4050_v47, %v3309_v45  ;;  %v3165_v33 = vld [vmem:[#allocation5 + $0x328] sm:$0xf]  ;;  %v3129_v45 = vld [vmem:[#allocation5 + $0x2e0] sm:$0xf]  ;;  %v2879_v47 = vld [vmem:[#allocation5 + $0x10c] sm:$0xf0] }
  0x63   :  { %1589 = vmatpush.bf16.msra.mxu3 %v3522_v50  ;;  %v2766_v50 = vor.u32 %v3910_v36, %v2763_v37  ;;  %v4014_v36 = vld [vmem:[#allocation5 + $0x348] sm:$0xf0]  ;;  %v3453_v37 = vld [vmem:[#allocation5 + $0x568] sm:$0xf]  ;;  %v3979_v16 = vld [vmem:[#allocation5 + $0x230] sm:$0xf0] }
  0x64   :  { %1548 = vmatpush.bf16.msra.mxu0 %v3482_v56  ;;  %v2985_v56 = vld [vmem:[#allocation5 + $0x1c0] sm:$0xf]  ;;  %v3166_v43 = vor.u32 %v4014_v36, %v3165_v33  ;;  %v3454_v44 = vor.u32 %v4086_v38, %v3453_v37  ;;  %v3563_v36 = vld [vmem:[#allocation5 + $0x664] sm:$0xf0] }
  0x65   :  { %1562 = vmatpush.bf16.msra.mxu1 %v2910_v58  ;;  %v3969_v58 = vld [vmem:[#allocation5 + $0x1e0] sm:$0xf0] }
  0x66   :  { %1576 = vmatpush.bf16.msra.mxu2 %v3198_v59  ;;  %v3273_v59 = vld [vmem:[#allocation5 + $0x400] sm:$0xf]  ;;  %v2986_v0 = vor.u32 %v3969_v58, %v2985_v56  ;;  %v3093_v58 = vld [vmem:[#allocation5 + $0x298] sm:$0xf] }
  0x67   :  { %1590 = vmatpush.bf16.msra.mxu3 %v3486_v63  ;;  %v2949_v63 = vld [vmem:[#allocation5 + $0x178] sm:$0xf]  ;;  %v3274_v4 = vor.u32 %v4041_v60, %v3273_v59  ;;  %v3929_v59 = vld [vmem:[#allocation5 + $0xa4] sm:$0xf]  ;;  %v2843_v60 = vld [vmem:[#allocation5 + $0xc4] sm:$0xf0] }
  0x68   :  { %1549 = vmatpush.bf16.msra.mxu0 %v3446_v6  ;;  %v3562_v6 = vor.u32 %v4113_v62, %v3561_v61  ;;  %v2950_v14 = vor.u32 %v3960_v1, %v2949_v63  ;;  %v3996_v61 = vld [vmem:[#allocation5 + $0x2b8] sm:$0xf0]  ;;  %v3381_v62 = vld [vmem:[#allocation5 + $0x4d8] sm:$0xf]  ;;  %v2769_v1 = vld [vmem:[#allocation5 + $0x10] sm:$0xf] }
  0x69   :  { %1563 = vmatpush.bf16.msra.mxu1 %v2874_v7  ;;  %v3237_v7 = vld [vmem:[#allocation5 + $0x3b8] sm:$0xf]  ;;  %v4068_v63 = vld [vmem:[#allocation5 + $0x4f8] sm:$0xf0] }
  0x6a   :  { %1577 = vmatpush.bf16.msra.mxu2 %v3162_v8  ;;  %v3026_v8 = vor.u32 %v3974_v2, %v3023_v3  ;;  %v3915_v2 = vld [vmem:[#allocation5 + $0x30] sm:$0xf0]  ;;  %v3057_v3 = vld [vmem:[#allocation5 + $0x250] sm:$0xf] }
  0x6b   :  { %1591 = vmatpush.bf16.msra.mxu3 %v3450_v12  ;;  %v3525_v12 = vld [vmem:[#allocation5 + $0x5f8] sm:$0xf] }
  0x6c   :  { %1550 = vmatpush.bf16.msra.mxu0 %v3410_v18  ;;  %v3238_v18 = vor.u32 %v4032_v11, %v3237_v7  ;;  %v3382_v7 = vor.u32 %v4068_v63, %v3381_v62  ;;  %v3345_v11 = vld [vmem:[#allocation5 + $0x490] sm:$0xf]  ;;  %v4010_v63 = vld [vmem:[#allocation5 + $0x32c] sm:$0xf] }
  0x6d   :  { %1564 = vmatpush.bf16.msra.mxu1 %v2838_v19  ;;  %v3526_v19 = vor.u32 %v4104_v13, %v3525_v12  ;;  %v4059_v12 = vld [vmem:[#allocation5 + $0x4b0] sm:$0xf0]  ;;  %v4046_v13 = vld [vmem:[#allocation5 + $0x44c] sm:$0xf] }
  0x6e   :  { %1578 = vmatpush.bf16.msra.mxu2 %v3126_v21  ;;  %v3201_v21 = vld [vmem:[#allocation5 + $0x370] sm:$0xf]  ;;  %v3346_v23 = vor.u32 %v4059_v12, %v3345_v11  ;;  %v4001_v12 = vld [vmem:[#allocation5 + $0x2e4] sm:$0xf] }
  0x6f   :  { %1592 = vmatpush.bf16.msra.mxu3 %v3414_v25  ;;  %v3489_v25 = vld [vmem:[#allocation5 + $0x5b0] sm:$0xf] }
  0x70   :  { %1551 = vmatpush.bf16.msra.mxu0 %v3374_v31  ;;  %v3202_v31 = vor.u32 %v4023_v24, %v3201_v21  ;;  %v3490_v32 = vor.u32 %v4095_v26, %v3489_v25  ;;  %v3599_v21 = vld [vmem:[#allocation5 + $0x6ac] sm:$0xf0]  ;;  %v3911_v24 = vld [vmem:[#allocation5 + $0x14] sm:$0xf]  ;;  %v3030_v26 = vor.u32 %v3979_v16, %v3029_v15 }
  0x71   :  { %1565 = vmatpush.bf16.msra.mxu1 %v2802_v34  ;;  %v3947_v34 = vld [vmem:[#allocation5 + $0x134] sm:$0xf] }
  0x72   :  { %1579 = vmatpush.bf16.msra.mxu2 %v3090_v35  ;;  %v2915_v35 = vld [vmem:[#allocation5 + $0x154] sm:$0xf0]  ;;  %v4015_v16 = vld [vmem:[#allocation5 + $0x350] sm:$0xf0] }
  0x73   :  { %1593 = vmatpush.bf16.msra.mxu3 %v3378_v39  ;;  %v2878_v39 = vor.u32 %v3942_v29, %v2877_v28  ;;  %v2918_v42 = vor.u32 %v3947_v34, %v2915_v35  ;;  %v4037_v28 = vld [vmem:[#allocation5 + $0x404] sm:$0xf]  ;;  %v3275_v29 = vld [vmem:[#allocation5 + $0x424] sm:$0xf0]  ;;  %v3970_v34 = vld [vmem:[#allocation5 + $0x1e8] sm:$0xf0] }
  0x74   :  { %1552 = vmatpush.bf16.msra.mxu0 %v3338_v46  ;;  %v3938_v46 = vld [vmem:[#allocation5 + $0xec] sm:$0xf]  ;;  %v4109_v35 = vld [vmem:[#allocation5 + $0x644] sm:$0xf]  ;;  %v3278_v38 = vor.u32 %v4037_v28, %v3275_v29  ;;  %v3137_v28 = vld [vmem:[#allocation5 + $0x2e8] sm:$0xf] }
  0x75   :  { %1566 = vmatpush.bf16.msra.mxu1 %v2766_v50  ;;  %v4077_v50 = vld [vmem:[#allocation5 + $0x540] sm:$0xf0]  ;;  %v4006_v29 = vld [vmem:[#allocation5 + $0x308] sm:$0xf0] }
  0x76   :  { %1580 = vmatpush.bf16.msra.mxu2 %v3054_v51  ;;  %v2842_v51 = vor.u32 %v3933_v41, %v2841_v40  ;;  %v3418_v56 = vor.u32 %v4077_v50, %v3417_v49  ;;  %v4028_v40 = vld [vmem:[#allocation5 + $0x3bc] sm:$0xf]  ;;  %v4019_v50 = vld [vmem:[#allocation5 + $0x374] sm:$0xf] }
  0x77   :  { %1594 = vmatpush.bf16.msra.mxu3 %v3342_v52  ;;  %1553 = vmatmul.bf16.vlgmr.msra.gmra.mxu0 %v4418_v20  ;;  %v2805_v52 = vld [vmem:[#allocation5 + $0x58] sm:$0xf] }
  0x78   :  { %1601 = vmatpush.bf16.msrb.mxu0 %v3022_v53  ;;  %1567 = vmatmul.bf16.vlgmr.msra.gmra.mxu1 %v4411_v57  ;;  %v3924_v53 = vld [vmem:[#allocation5 + $0x78] sm:$0xf0] }
  0x79   :  { %1615 = vmatpush.bf16.msrb.mxu1 %v3310_v54  ;;  %1581 = vmatmul.bf16.vlgmr.msra.gmra.mxu2 %v4414_v5  ;;  %v2882_v54 = vor.u32 %v3938_v46, %v2879_v47  ;;  %v2957_v46 = vld [vmem:[#allocation5 + $0x180] sm:$0xf]  ;;  %v3961_v47 = vld [vmem:[#allocation5 + $0x1a0] sm:$0xf0] }
  0x7a   :  { %1629 = vmatpush.bf16.msrb.mxu2 %v3598_v55  ;;  %1595 = vmatmul.bf16.vlgmr.msra.gmra.mxu3 %v4418_v20  ;;  %v3130_v55 = vor.u32 %v4005_v48, %v3129_v45  ;;  %v3566_v45 = vor.u32 %v4109_v35, %v3563_v36  ;;  %v4073_v35 = vld [vmem:[#allocation5 + $0x524] sm:$0xf]  ;;  %v3419_v36 = vld [vmem:[#allocation5 + $0x544] sm:$0xf0] }
  0x7b   :  { %1643 = vmatpush.bf16.msrb.mxu3 %v3026_v8  ;;  %v3987_v8 = vld [vmem:[#allocation5 + $0x270] sm:$0xf0] }
  0x7c   :  { %1602 = vmatpush.bf16.msrb.mxu0 %v2986_v0  ;;  %v2806_v0 = vor.u32 %v3924_v53, %v2805_v52  ;;  %v3058_v22 = vor.u32 %v3987_v8, %v3057_v3  ;;  %v3245_v52 = vld [vmem:[#allocation5 + $0x3c0] sm:$0xf]  ;;  %v2958_v53 = vor.u32 %v3961_v47, %v2957_v46  ;;  %v4024_v3 = vld [vmem:[#allocation5 + $0x398] sm:$0xf0]  ;;  %v3491_v8 = vld [vmem:[#allocation5 + $0x5d4] sm:$0xf0] }
  0x7d   :  { %1616 = vmatpush.bf16.msrb.mxu1 %v3274_v4  ;;  %v2846_v4 = vor.u32 %v3929_v59, %v2843_v60  ;;  %v3952_v59 = vld [vmem:[#allocation5 + $0x158] sm:$0xf0]  ;;  %v2777_v46 = vld [vmem:[#allocation5 + $0x18] sm:$0xf] }
  0x7e   :  { %1630 = vmatpush.bf16.msrb.mxu2 %v3562_v6  ;;  %v3094_v6 = vor.u32 %v3996_v61, %v3093_v58  ;;  %v2921_v58 = vld [vmem:[#allocation5 + $0x138] sm:$0xf]  ;;  %v3916_v47 = vld [vmem:[#allocation5 + $0x38] sm:$0xf0] }
  0x7f   :  { %1644 = vmatpush.bf16.msrb.mxu3 %v2990_v17  ;;  %v2770_v17 = vor.u32 %v3915_v2, %v2769_v1  ;;  %v3167_v1 = vld [vmem:[#allocation5 + $0x34c] sm:$0xf0]  ;;  %v3209_v2 = vld [vmem:[#allocation5 + $0x378] sm:$0xf] }
  0x80   :  { %1603 = vmatpush.bf16.msrb.mxu0 %v2950_v14  ;;  %v3311_v14 = vld [vmem:[#allocation5 + $0x46c] sm:$0xf0] }
  0x81   :  { %1617 = vmatpush.bf16.msrb.mxu1 %v3238_v18  ;;  %v2810_v18 = vor.u32 %v3920_v9, %v2807_v10  ;;  %v3314_v25 = vor.u32 %v4046_v13, %v3311_v14  ;;  %v3170_v9 = vor.u32 %v4010_v63, %v3167_v1  ;;  %v3210_v10 = vor.u32 %v4024_v3, %v3209_v2  ;;  %v3131_v13 = vld [vmem:[#allocation5 + $0x304] sm:$0xf0]  ;;  %v3173_v14 = vld [vmem:[#allocation5 + $0x330] sm:$0xf]  ;;  %v3988_v63 = vld [vmem:[#allocation5 + $0x278] sm:$0xf0] }
  0x82   :  { %1631 = vmatpush.bf16.msrb.mxu2 %v3526_v19  ;;  %v4118_v19 = vld [vmem:[#allocation5 + $0x68c] sm:$0xf]  ;;  %v4119_v3 = vld [vmem:[#allocation5 + $0x694] sm:$0xf] }
  0x83   :  { %1645 = vmatpush.bf16.msrb.mxu3 %v2954_v30  ;;  %v3317_v30 = vld [vmem:[#allocation5 + $0x450] sm:$0xf]  ;;  %v3602_v33 = vor.u32 %v4118_v19, %v3599_v21  ;;  %v2849_v19 = vld [vmem:[#allocation5 + $0xa8] sm:$0xf]  ;;  %v3934_v21 = vld [vmem:[#allocation5 + $0xc8] sm:$0xf0] }
  0x84   :  { %1604 = vmatpush.bf16.msrb.mxu0 %v2914_v27  ;;  %v2771_v27 = vld [vmem:[#allocation5 + $0x34] sm:$0xf0]  ;;  %v4038_v1 = vld [vmem:[#allocation5 + $0x40c] sm:$0xf] }
  0x85   :  { %1618 = vmatpush.bf16.msrb.mxu1 %v3202_v31  ;;  %v4051_v31 = vld [vmem:[#allocation5 + $0x470] sm:$0xf0]  ;;  %v2774_v37 = vor.u32 %v3911_v24, %v2771_v27  ;;  %v3174_v24 = vor.u32 %v4015_v16, %v3173_v14  ;;  %v3095_v27 = vld [vmem:[#allocation5 + $0x2bc] sm:$0xf0]  ;;  %v3247_v16 = vld [vmem:[#allocation5 + $0x3e4] sm:$0xf0] }
  0x86   :  { %1632 = vmatpush.bf16.msrb.mxu2 %v3490_v32  ;;  %v2993_v32 = vld [vmem:[#allocation5 + $0x1c8] sm:$0xf] }
  0x87   :  { %1646 = vmatpush.bf16.msrb.mxu3 %v2918_v42  ;;  %v2994_v41 = vor.u32 %v3970_v34, %v2993_v32  ;;  %v3239_v42 = vld [vmem:[#allocation5 + $0x3dc] sm:$0xf0] }
  0x88   :  { %1605 = vmatpush.bf16.msrb.mxu0 %v2878_v39  ;;  %v3318_v39 = vor.u32 %v4051_v31, %v3317_v30  ;;  %v3242_v48 = vor.u32 %v4028_v40, %v3239_v42  ;;  %v2813_v30 = vld [vmem:[#allocation5 + $0x60] sm:$0xf]  ;;  %v3925_v31 = vld [vmem:[#allocation5 + $0x80] sm:$0xf0]  ;;  %v3605_v42 = vld [vmem:[#allocation5 + $0x690] sm:$0xf] }
  0x89   :  { %1619 = vmatpush.bf16.msrb.mxu1 %v3166_v43  ;;  %v3281_v43 = vld [vmem:[#allocation5 + $0x408] sm:$0xf]  ;;  %v2814_v34 = vor.u32 %v3925_v31, %v2813_v30  ;;  %v3101_v40 = vld [vmem:[#allocation5 + $0x2a0] sm:$0xf]  ;;  %v3957_v30 = vld [vmem:[#allocation5 + $0x184] sm:$0xf] }
  0x8a   :  { %1633 = vmatpush.bf16.msrb.mxu2 %v3454_v44  ;;  %v4042_v44 = vld [vmem:[#allocation5 + $0x428] sm:$0xf0]  ;;  %v4101_v31 = vld [vmem:[#allocation5 + $0x604] sm:$0xf] }
  0x8b   :  { %1647 = vmatpush.bf16.msrb.mxu3 %v2882_v54  ;;  %v3282_v49 = vor.u32 %v4042_v44, %v3281_v43  ;;  %v4033_v54 = vld [vmem:[#allocation5 + $0x3e0] sm:$0xf0]  ;;  %v4123_v43 = vld [vmem:[#allocation5 + $0x6b0] sm:$0xf0] }
  0x8c   :  { %1606 = vmatpush.bf16.msrb.mxu0 %v2842_v51  ;;  %v3203_v51 = vld [vmem:[#allocation5 + $0x394] sm:$0xf0]  ;;  %v3246_v62 = vor.u32 %v4033_v54, %v3245_v52 }
  0x8d   :  { %1620 = vmatpush.bf16.msrb.mxu1 %v3130_v55  ;;  %v4100_v55 = vld [vmem:[#allocation5 + $0x5fc] sm:$0xf]  ;;  %v3206_v61 = vor.u32 %v4019_v50, %v3203_v51  ;;  %v3383_v51 = vld [vmem:[#allocation5 + $0x4fc] sm:$0xf0]  ;;  %v3319_v54 = vld [vmem:[#allocation5 + $0x474] sm:$0xf0] }
  0x8e   :  { %1634 = vmatpush.bf16.msrb.mxu2 %v3418_v56  ;;  %v3527_v56 = vld [vmem:[#allocation5 + $0x61c] sm:$0xf0]  ;;  %v4064_v50 = vld [vmem:[#allocation5 + $0x4dc] sm:$0xf] }
  0x8f   :  { %1648 = vmatpush.bf16.msrb.mxu3 %v2846_v4  ;;  %v3530_v60 = vor.u32 %v4100_v55, %v3527_v56  ;;  %v2885_v4 = vld [vmem:[#allocation5 + $0xf0] sm:$0xf]  ;;  %v3386_v52 = vor.u32 %v4064_v50, %v3383_v51  ;;  %v3569_v56 = vld [vmem:[#allocation5 + $0x648] sm:$0xf]  ;;  %v4078_v50 = vld [vmem:[#allocation5 + $0x548] sm:$0xf0] }
  0x90   :  { %1607 = vmatpush.bf16.msrb.mxu0 %v2806_v0  ;;  %v2922_v0 = vor.u32 %v3952_v59, %v2921_v58  ;;  %v4114_v58 = vld [vmem:[#allocation5 + $0x668] sm:$0xf0] }
  0x91   :  { %1621 = vmatpush.bf16.msrb.mxu1 %v3094_v6  ;;  %v3943_v6 = vld [vmem:[#allocation5 + $0x110] sm:$0xf0]  ;;  %v3570_v59 = vor.u32 %v4114_v58, %v3569_v56  ;;  %v3463_v56 = vld [vmem:[#allocation5 + $0x594] sm:$0xf0] }
  0x92   :  { %1635 = vmatpush.bf16.msrb.mxu2 %v3382_v7  ;;  %v4091_v7 = vld [vmem:[#allocation5 + $0x5b4] sm:$0xf]  ;;  %v2886_v15 = vor.u32 %v3943_v6, %v2885_v4  ;;  %v3607_v4 = vld [vmem:[#allocation5 + $0x6b4] sm:$0xf0]  ;;  %v3283_v6 = vld [vmem:[#allocation5 + $0x42c] sm:$0xf0] }
  0x93   :  { %1649 = vmatpush.bf16.msrb.mxu3 %v2810_v18  ;;  %v3494_v11 = vor.u32 %v4091_v7, %v3491_v8  ;;  %v3455_v18 = vld [vmem:[#allocation5 + $0x58c] sm:$0xf0]  ;;  %v3610_v7 = vor.u32 %v4119_v3, %v3607_v4  ;;  %v3286_v8 = vor.u32 %v4038_v1, %v3283_v6  ;;  %v3993_v1 = vld [vmem:[#allocation5 + $0x2a4] sm:$0xf]  ;;  %v3930_v3 = vld [vmem:[#allocation5 + $0xac] sm:$0xf] }
  0x94   :  { %1608 = vmatpush.bf16.msrb.mxu0 %v2770_v17  ;;  %v4082_v17 = vld [vmem:[#allocation5 + $0x56c] sm:$0xf]  ;;  %v3427_v6 = vld [vmem:[#allocation5 + $0x54c] sm:$0xf0] }
  0x95   :  { %1622 = vmatpush.bf16.msrb.mxu1 %v3058_v22  ;;  %v3458_v22 = vor.u32 %v4082_v17, %v3455_v18  ;;  %v3966_v17 = vld [vmem:[#allocation5 + $0x1cc] sm:$0xf] }
  0x96   :  { %1636 = vmatpush.bf16.msrb.mxu2 %v3346_v23  ;;  %v3134_v23 = vor.u32 %v4001_v12, %v3131_v13  ;;  %v4105_v13 = vld [vmem:[#allocation5 + $0x620] sm:$0xf0]  ;;  %v4110_v18 = vld [vmem:[#allocation5 + $0x64c] sm:$0xf] }
  0x97   :  { %1609 = vmatmul.bf16.vlgmr.msrb.gmra.mxu0 %v4411_v57  ;;  %1650 = vmatpush.bf16.msrb.mxu3 %v2774_v37  ;;  %v3422_v37 = vor.u32 %v4073_v35, %v3419_v36  ;;  %v4074_v4 = vld [vmem:[#allocation5 + $0x52c] sm:$0xf] }
  0x98   :  { %1657 = vmatpush.bf16.msra.mxu0 %v3314_v25  ;;  %1623 = vmatmul.bf16.vlgmr.msrb.gmra.mxu1 %v4414_v5  ;;  %v3992_v25 = vld [vmem:[#allocation5 + $0x29c] sm:$0xf] }
  0x99   :  { %1671 = vmatpush.bf16.msra.mxu1 %v3602_v33  ;;  %1637 = vmatmul.bf16.vlgmr.msrb.gmra.mxu2 %v4418_v20  ;;  %v3098_v32 = vor.u32 %v3992_v25, %v3095_v27  ;;  %v3138_v33 = vor.u32 %v4006_v29, %v3137_v28  ;;  %v3497_v25 = vld [vmem:[#allocation5 + $0x5b8] sm:$0xf]  ;;  %v4020_v28 = vld [vmem:[#allocation5 + $0x37c] sm:$0xf]  ;;  %v3211_v29 = vld [vmem:[#allocation5 + $0x39c] sm:$0xf0] }
  0x9a   :  { %1685 = vmatpush.bf16.msra.mxu2 %v3030_v26  ;;  %1651 = vmatmul.bf16.vlgmr.msrb.gmra.mxu3 %v4411_v57  ;;  %v2850_v26 = vor.u32 %v3934_v21, %v2849_v19  ;;  %v3571_v19 = vld [vmem:[#allocation5 + $0x66c] sm:$0xf0] }
  0x9b   :  { %1699 = vmatpush.bf16.msra.mxu3 %v3318_v39  ;;  %v3059_v39 = vld [vmem:[#allocation5 + $0x274] sm:$0xf0] }
  0x9c   :  { %1658 = vmatpush.bf16.msra.mxu0 %v3278_v38  ;;  %v3983_v38 = vld [vmem:[#allocation5 + $0x254] sm:$0xf] }
  0x9d   :  { %1672 = vmatpush.bf16.msra.mxu1 %v3566_v45  ;;  %v3062_v44 = vor.u32 %v3983_v38, %v3059_v39  ;;  %v4087_v38 = vld [vmem:[#allocation5 + $0x590] sm:$0xf0] }
  0x9e   :  { %1686 = vmatpush.bf16.msra.mxu2 %v2994_v41  ;;  %v3997_v41 = vld [vmem:[#allocation5 + $0x2c0] sm:$0xf0] }
  0x9f   :  { %1700 = vmatpush.bf16.msra.mxu3 %v3282_v49  ;;  %v3102_v45 = vor.u32 %v3997_v41, %v3101_v40  ;;  %v2778_v49 = vor.u32 %v3916_v47, %v2777_v46  ;;  %v4011_v40 = vld [vmem:[#allocation5 + $0x334] sm:$0xf]  ;;  %v3175_v41 = vld [vmem:[#allocation5 + $0x354] sm:$0xf0]  ;;  %v2923_v46 = vld [vmem:[#allocation5 + $0x15c] sm:$0xf0] }
  0xa0   :  { %1659 = vmatpush.bf16.msra.mxu0 %v3242_v48  ;;  %v3606_v48 = vor.u32 %v4123_v43, %v3605_v42  ;;  %v3948_v42 = vld [vmem:[#allocation5 + $0x13c] sm:$0xf] }
  0xa1   :  { %1673 = vmatpush.bf16.msra.mxu1 %v3530_v60  ;;  %v4055_v60 = vld [vmem:[#allocation5 + $0x494] sm:$0xf]  ;;  %v4092_v43 = vld [vmem:[#allocation5 + $0x5bc] sm:$0xf] }
  0xa2   :  { %1687 = vmatpush.bf16.msra.mxu2 %v2958_v53  ;;  %v4047_v53 = vld [vmem:[#allocation5 + $0x454] sm:$0xf] }
  0xa3   :  { %1701 = vmatpush.bf16.msra.mxu3 %v3246_v62  ;;  %v3322_v55 = vor.u32 %v4047_v53, %v3319_v54  ;;  %v3065_v62 = vld [vmem:[#allocation5 + $0x258] sm:$0xf]  ;;  %v3139_v53 = vld [vmem:[#allocation5 + $0x30c] sm:$0xf0]  ;;  %v3939_v54 = vld [vmem:[#allocation5 + $0xf4] sm:$0xf] }
  0xa4   :  { %1660 = vmatpush.bf16.msra.mxu0 %v3206_v61  ;;  %v3347_v61 = vld [vmem:[#allocation5 + $0x4b4] sm:$0xf0]  ;;  %v3066_v2 = vor.u32 %v3988_v63, %v3065_v62  ;;  %v3389_v62 = vld [vmem:[#allocation5 + $0x4e0] sm:$0xf]  ;;  %v4069_v63 = vld [vmem:[#allocation5 + $0x500] sm:$0xf0] }
  0xa5   :  { %1674 = vmatpush.bf16.msra.mxu1 %v3494_v11  ;;  %v3533_v11 = vld [vmem:[#allocation5 + $0x600] sm:$0xf] }
  0xa6   :  { %1688 = vmatpush.bf16.msra.mxu2 %v2922_v0  ;;  %v3350_v0 = vor.u32 %v4055_v60, %v3347_v61  ;;  %v3534_v14 = vor.u32 %v4105_v13, %v3533_v11  ;;  %v3353_v11 = vld [vmem:[#allocation5 + $0x498] sm:$0xf]  ;;  %v4065_v13 = vld [vmem:[#allocation5 + $0x4e4] sm:$0xf] }
  0xa7   :  { %1702 = vmatpush.bf16.msra.mxu3 %v3210_v10  ;;  %v3031_v10 = vld [vmem:[#allocation5 + $0x234] sm:$0xf0] }
  0xa8   :  { %1661 = vmatpush.bf16.msra.mxu0 %v3170_v9  ;;  %v3975_v9 = vld [vmem:[#allocation5 + $0x214] sm:$0xf] }
  0xa9   :  { %1675 = vmatpush.bf16.msra.mxu1 %v3458_v22  ;;  %v3034_v12 = vor.u32 %v3975_v9, %v3031_v10  ;;  %v2995_v22 = vld [vmem:[#allocation5 + $0x1ec] sm:$0xf0]  ;;  %v3430_v9 = vor.u32 %v4074_v4, %v3427_v6  ;;  %v3469_v4 = vld [vmem:[#allocation5 + $0x578] sm:$0xf]  ;;  %v4088_v6 = vld [vmem:[#allocation5 + $0x598] sm:$0xf0] }
  0xaa   :  { %1689 = vmatpush.bf16.msra.mxu2 %v2886_v15  ;;  %v4029_v15 = vld [vmem:[#allocation5 + $0x3c4] sm:$0xf] }
  0xab   :  { %1703 = vmatpush.bf16.msra.mxu3 %v3174_v24  ;;  %v3250_v21 = vor.u32 %v4029_v15, %v3247_v16  ;;  %v2998_v24 = vor.u32 %v3966_v17, %v2995_v22  ;;  %v3391_v15 = vld [vmem:[#allocation5 + $0x504] sm:$0xf0]  ;;  %v3984_v16 = vld [vmem:[#allocation5 + $0x25c] sm:$0xf]  ;;  %v3067_v17 = vld [vmem:[#allocation5 + $0x27c] sm:$0xf0] }
  0xac   :  { %1662 = vmatpush.bf16.msra.mxu0 %v3134_v23  ;;  %v3574_v23 = vor.u32 %v4110_v18, %v3571_v19  ;;  %v3394_v18 = vor.u32 %v4065_v13, %v3391_v15  ;;  %v3921_v19 = vld [vmem:[#allocation5 + $0x64] sm:$0xf] }
  0xad   :  { %1676 = vmatpush.bf16.msra.mxu1 %v3422_v37  ;;  %v3461_v37 = vld [vmem:[#allocation5 + $0x570] sm:$0xf] }
  0xae   :  { %1690 = vmatpush.bf16.msra.mxu2 %v2850_v26  ;;  %v4096_v26 = vld [vmem:[#allocation5 + $0x5d8] sm:$0xf0]  ;;  %v3462_v39 = vor.u32 %v4087_v38, %v3461_v37  ;;  %v4115_v37 = vld [vmem:[#allocation5 + $0x670] sm:$0xf0]  ;;  %v3037_v38 = vld [vmem:[#allocation5 + $0x218] sm:$0xf] }
  0xaf   :  { %1704 = vmatpush.bf16.msra.mxu3 %v3138_v33  ;;  %v3498_v27 = vor.u32 %v4096_v26, %v3497_v25  ;;  %v3214_v33 = vor.u32 %v4020_v28, %v3211_v29  ;;  %v3613_v25 = vld [vmem:[#allocation5 + $0x698] sm:$0xf]  ;;  %v4124_v26 = vld [vmem:[#allocation5 + $0x6b8] sm:$0xf0] }
  0xb0   :  { %1663 = vmatpush.bf16.msra.mxu0 %v3098_v32  ;;  %v3535_v32 = vld [vmem:[#allocation5 + $0x624] sm:$0xf0]  ;;  %v3614_v28 = vor.u32 %v4124_v26, %v3613_v25  ;;  %v3912_v29 = vld [vmem:[#allocation5 + $0x1c] sm:$0xf]  ;;  %v3181_v25 = vld [vmem:[#allocation5 + $0x338] sm:$0xf] }
  0xb1   :  { %1677 = vmatpush.bf16.msra.mxu1 %v3386_v52  ;;  %v3538_v35 = vor.u32 %v4101_v31, %v3535_v32  ;;  %v4002_v52 = vld [vmem:[#allocation5 + $0x2ec] sm:$0xf]  ;;  %v4056_v32 = vld [vmem:[#allocation5 + $0x49c] sm:$0xf] }
  0xb2   :  { %1691 = vmatpush.bf16.msra.mxu2 %v2814_v34  ;;  %v2959_v34 = vld [vmem:[#allocation5 + $0x1a4] sm:$0xf0]  ;;  %v3142_v58 = vor.u32 %v4002_v52, %v3139_v53  ;;  %v4043_v52 = vld [vmem:[#allocation5 + $0x430] sm:$0xf0]  ;;  %v4016_v26 = vld [vmem:[#allocation5 + $0x358] sm:$0xf0] }
  0xb3   :  { %1705 = vmatpush.bf16.msra.mxu3 %v3102_v45  ;;  %v2962_v36 = vor.u32 %v3957_v30, %v2959_v34  ;;  %v3178_v45 = vor.u32 %v4011_v40, %v3175_v41  ;;  %v2779_v30 = vld [vmem:[#allocation5 + $0x3c] sm:$0xf0] }
  0xb4   :  { %1664 = vmatpush.bf16.msra.mxu0 %v3062_v44  ;;  %v3499_v44 = vld [vmem:[#allocation5 + $0x5dc] sm:$0xf0]  ;;  %v4441_v31 = vpop.f32.mrf.mxu0  ;;  %v2782_v34 = vor.u32 %v3912_v29, %v2779_v30  ;;  %v3182_v29 = vor.u32 %v4016_v26, %v3181_v25 }
  0xb5   :  { %1678 = vmatpush.bf16.msra.mxu1 %v3350_v0  ;;  %v3502_v47 = vor.u32 %v4092_v43, %v3499_v44  ;;  %v3390_v0 = vor.u32 %v4069_v63, %v3389_v62  ;;  %v4052_v43 = vld [vmem:[#allocation5 + $0x478] sm:$0xf0]  ;;  %v3962_v62 = vld [vmem:[#allocation5 + $0x1a8] sm:$0xf0]  ;;  %v3253_v63 = vld [vmem:[#allocation5 + $0x3c8] sm:$0xf] }
  0xb6   :  { %1692 = vmatpush.bf16.msra.mxu2 %v2778_v49  ;;  %v3425_v49 = vld [vmem:[#allocation5 + $0x528] sm:$0xf] }
  0xb7   :  { %1665 = vmatmul.bf16.vlgmr.msra.gmra.mxu0 %v4414_v5  ;;  %1706 = vmatpush.bf16.msra.mxu3 %v3066_v2  ;;  %v3426_v51 = vor.u32 %v4078_v50, %v3425_v49  ;;  %v3103_v2 = vld [vmem:[#allocation5 + $0x2c4] sm:$0xf0]  ;;  %v3971_v50 = vld [vmem:[#allocation5 + $0x1f0] sm:$0xf0] }
  0xb8   :  { %1713 = vmatpush.bf16.msrb.mxu0 %v3606_v48  ;;  %1679 = vmatmul.bf16.vlgmr.msra.gmra.mxu1 %v4418_v20  ;;  %v2926_v48 = vor.u32 %v3948_v42, %v2923_v46  ;;  %v3325_v42 = vld [vmem:[#allocation5 + $0x458] sm:$0xf]  ;;  %v3541_v46 = vld [vmem:[#allocation5 + $0x608] sm:$0xf] }
  0xb9   :  { %1693 = vmatmul.bf16.vlgmr.msra.gmra.mxu2 %v4411_v57  ;;  %1727 = vmatpush.bf16.msrb.mxu1 %v3034_v12  ;;  %v4060_v12 = vld [vmem:[#allocation5 + $0x4b8] sm:$0xf0]  ;;  %v3326_v44 = vor.u32 %v4052_v43, %v3325_v42 }
  0xba   :  { %1741 = vmatpush.bf16.msrb.mxu2 %v3322_v55  ;;  %1707 = vmatmul.bf16.vlgmr.msra.gmra.mxu3 %v4414_v5  ;;  %v4083_v55 = vld [vmem:[#allocation5 + $0x574] sm:$0xf] }
  0xbb   :  { %1755 = vmatpush.bf16.msrb.mxu3 %v3610_v7  ;;  %v3466_v60 = vor.u32 %v4083_v55, %v3463_v56  ;;  %v3106_v7 = vor.u32 %v3993_v1, %v3103_v2 }
  0xbc   :  { %1714 = vmatpush.bf16.msrb.mxu0 %v3570_v59  ;;  %v2887_v59 = vld [vmem:[#allocation5 + $0x114] sm:$0xf0]  ;;  %v4453_v1 = vpop.f32.mrf.mxu0 }
  0xbd   :  { %1728 = vmatpush.bf16.msrb.mxu1 %v2998_v24  ;;  %v2890_v61 = vor.u32 %v3939_v54, %v2887_v59  ;;  %v4437_v22 = vpop.f32.mrf.mxu3  ;;  %v4097_v59 = vld [vmem:[#allocation5 + $0x5e0] sm:$0xf0] }
  0xbe   :  { %1742 = vmatpush.bf16.msrb.mxu2 %v3286_v8  ;;  %v2851_v8 = vld [vmem:[#allocation5 + $0xcc] sm:$0xf0] }
  0xbf   :  { %1756 = vmatpush.bf16.msrb.mxu3 %v3574_v23  ;;  %v2854_v10 = vor.u32 %v3930_v3, %v2851_v8  ;;  %v3070_v23 = vor.u32 %v3984_v16, %v3067_v17  ;;  %v3470_v8 = vor.u32 %v4088_v6, %v3469_v4  ;;  %v3433_v17 = vld [vmem:[#allocation5 + $0x530] sm:$0xf] }
  0xc0   :  { %1715 = vmatpush.bf16.msrb.mxu0 %v3534_v14  ;;  %v3354_v14 = vor.u32 %v4060_v12, %v3353_v11  ;;  %v4025_v11 = vld [vmem:[#allocation5 + $0x3a0] sm:$0xf0] }
  0xc1   :  { %1729 = vmatpush.bf16.msrb.mxu1 %v2962_v36 }
  0xc2   :  { %1743 = vmatpush.bf16.msrb.mxu2 %v3250_v21  ;;  %v2815_v21 = vld [vmem:[#allocation5 + $0x84] sm:$0xf0] }
  0xc3   :  { %1757 = vmatpush.bf16.msrb.mxu3 %v3538_v35  ;;  %v2818_v24 = vor.u32 %v3921_v19, %v2815_v21  ;;  %v3577_v35 = vld [vmem:[#allocation5 + $0x650] sm:$0xf]  ;;  %v2893_v19 = vld [vmem:[#allocation5 + $0xf8] sm:$0xf] }
  0xc4   :  { %1716 = vmatpush.bf16.msrb.mxu0 %v3498_v27  ;;  %v4439_v27 = vpop.f32.mrf.mxu2  ;;  %v3578_v40 = vor.u32 %v4115_v37, %v3577_v35  ;;  %v3145_v37 = vld [vmem:[#allocation5 + $0x2f0] sm:$0xf] }
  0xc5   :  { %1730 = vmatpush.bf16.msrb.mxu1 %v2926_v48  ;;  %v3001_v48 = vld [vmem:[#allocation5 + $0x1d0] sm:$0xf]  ;;  %v4447_v53 = vpop.f32.mrf.mxu3 }
  0xc6   :  { %1744 = vmatpush.bf16.msrb.mxu2 %v3214_v33  ;;  %v3355_v33 = vld [vmem:[#allocation5 + $0x4bc] sm:$0xf0]  ;;  %v3002_v54 = vor.u32 %v3971_v50, %v3001_v48  ;;  %v3926_v50 = vld [vmem:[#allocation5 + $0x88] sm:$0xf0] }
  0xc7   :  { %1758 = vmatpush.bf16.msrb.mxu3 %v3502_v47  ;;  %v3358_v36 = vor.u32 %v4056_v32, %v3355_v33  ;;  %v4106_v47 = vld [vmem:[#allocation5 + $0x628] sm:$0xf0]  ;;  %v3397_v32 = vld [vmem:[#allocation5 + $0x4e8] sm:$0xf] }
  0xc8   :  { %1717 = vmatpush.bf16.msrb.mxu0 %v3462_v39  ;;  %v3980_v39 = vld [vmem:[#allocation5 + $0x238] sm:$0xf0]  ;;  %v3542_v49 = vor.u32 %v4106_v47, %v3541_v46  ;;  %v4070_v33 = vld [vmem:[#allocation5 + $0x508] sm:$0xf0]  ;;  %v4061_v46 = vld [vmem:[#allocation5 + $0x4c0] sm:$0xf0] }
  0xc9   :  { %1731 = vmatpush.bf16.msrb.mxu1 %v2890_v61  ;;  %v3038_v41 = vor.u32 %v3980_v39, %v3037_v38  ;;  %v3398_v35 = vor.u32 %v4070_v33, %v3397_v32  ;;  %v4007_v38 = vld [vmem:[#allocation5 + $0x310] sm:$0xf0]  ;;  %v2821_v47 = vld [vmem:[#allocation5 + $0x68] sm:$0xf] }
  0xca   :  { %1745 = vmatpush.bf16.msrb.mxu2 %v3178_v45  ;;  %v4445_v45 = vpop.f32.mrf.mxu1 }
  0xcb   :  { %1759 = vmatpush.bf16.msrb.mxu3 %v3466_v60  ;;  %v2965_v60 = vld [vmem:[#allocation5 + $0x188] sm:$0xf] }
  0xcc   :  { %1718 = vmatpush.bf16.msrb.mxu0 %v3426_v51  ;;  %v3289_v51 = vld [vmem:[#allocation5 + $0x410] sm:$0xf]  ;;  %v4450_v56 = vpop.f32.mrf.mxu2  ;;  %v2966_v2 = vor.u32 %v3962_v62, %v2965_v60  ;;  %v3073_v60 = vld [vmem:[#allocation5 + $0x260] sm:$0xf]  ;;  %v3989_v62 = vld [vmem:[#allocation5 + $0x280] sm:$0xf0] }
  0xcd   :  { %1732 = vmatpush.bf16.msrb.mxu1 %v2854_v10  ;;  %v3290_v55 = vor.u32 %v4043_v52, %v3289_v51  ;;  %v3217_v10 = vld [vmem:[#allocation5 + $0x380] sm:$0xf]  ;;  %v3109_v51 = vld [vmem:[#allocation5 + $0x2a8] sm:$0xf]  ;;  %v3998_v52 = vld [vmem:[#allocation5 + $0x2c8] sm:$0xf0] }
  0xce   :  { %1746 = vmatpush.bf16.msrb.mxu2 %v3142_v58  ;;  %v3505_v58 = vld [vmem:[#allocation5 + $0x5c0] sm:$0xf] }
  0xcf   :  { %1760 = vmatpush.bf16.msrb.mxu3 %v3430_v9  ;;  %v3506_v61 = vor.u32 %v4097_v59, %v3505_v58  ;;  %v3953_v9 = vld [vmem:[#allocation5 + $0x160] sm:$0xf0]  ;;  %v2785_v58 = vld [vmem:[#allocation5 + $0x20] sm:$0xf] }
  0xd0   :  { %1719 = vmatpush.bf16.msrb.mxu0 %v3390_v0  ;;  %v4034_v0 = vld [vmem:[#allocation5 + $0x3e8] sm:$0xf0]  ;;  %v3917_v59 = vld [vmem:[#allocation5 + $0x40] sm:$0xf0] }
  0xd1   :  { %1733 = vmatpush.bf16.msrb.mxu1 %v2818_v24  ;;  %v3254_v3 = vor.u32 %v4034_v0, %v3253_v63  ;;  %v3944_v24 = vld [vmem:[#allocation5 + $0x118] sm:$0xf0]  ;;  %v3074_v0 = vor.u32 %v3989_v62, %v3073_v60 }
  0xd2   :  { %1747 = vmatpush.bf16.msrb.mxu2 %v3106_v7  ;;  %v2929_v7 = vld [vmem:[#allocation5 + $0x140] sm:$0xf]  ;;  %v4455_v12 = vpop.f32.mrf.mxu1 }
  0xd3   :  { %1761 = vmatpush.bf16.msrb.mxu3 %v3394_v18  ;;  %v2930_v13 = vor.u32 %v3953_v9, %v2929_v7  ;;  %v4079_v18 = vld [vmem:[#allocation5 + $0x550] sm:$0xf0] }
  0xd4   :  { %1720 = vmatpush.bf16.msrb.mxu0 %v3354_v14  ;;  %v3218_v14 = vor.u32 %v4025_v11, %v3217_v10  ;;  %v4457_v30 = vpop.f32.mrf.mxu0 }
  0xd5   :  { %1734 = vmatpush.bf16.msrb.mxu1 %v2782_v34  ;;  %v2857_v34 = vld [vmem:[#allocation5 + $0xb0] sm:$0xf] }
  0xd6   :  { %1748 = vmatpush.bf16.msrb.mxu2 %v3070_v23  ;;  %v3434_v23 = vor.u32 %v4079_v18, %v3433_v17 }
  0xd7   :  { %1721 = vmatmul.bf16.vlgmr.msrb.gmra.mxu0 %v4418_v20  ;;  %1762 = vmatpush.bf16.msrb.mxu3 %v3358_v36  ;;  %v3935_v36 = vld [vmem:[#allocation5 + $0xd0] sm:$0xf0] }
  0xd8   :  { %1769 = vmatpush.bf16.msra.mxu0 %v3038_v41  ;;  %1735 = vmatmul.bf16.vlgmr.msrb.gmra.mxu1 %v4411_v57  ;;  %v2858_v39 = vor.u32 %v3935_v36, %v2857_v34 }
  0xd9   :  { %1749 = vmatmul.bf16.vlgmr.msrb.gmra.mxu2 %v4414_v5  ;;  %1783 = vmatpush.bf16.msra.mxu1 %v3326_v44  ;;  %v3361_v44 = vld [vmem:[#allocation5 + $0x4a0] sm:$0xf] }
  0xda   :  { %1797 = vmatpush.bf16.msra.mxu2 %v3614_v28  ;;  %1763 = vmatmul.bf16.vlgmr.msrb.gmra.mxu3 %v4418_v20  ;;  %v2894_v28 = vor.u32 %v3944_v24, %v2893_v19  ;;  %v4459_v42 = vpop.f32.mrf.mxu1 }
  0xdc   :  { %1770 = vmatpush.bf16.msra.mxu0 %v3002_v54  ;;  %v1526_v15 = vpop.f32.mrf.mxu2  ;;  %v2822_v54 = vor.u32 %v3926_v50, %v2821_v47  ;;  %v1500_v63 = vpop.f32.mrf.mxu0 }
  0xdd   :  { %1784 = vmatpush.bf16.msra.mxu1 %v3290_v55  ;;  %v1540_v16 = vpop.f32.mrf.mxu3  ;;  %v3110_v55 = vor.u32 %v3998_v52, %v3109_v51 }
  0xde   :  { %1798 = vmatpush.bf16.msra.mxu2 %v3578_v40  ;;  %v1541_v21 = vadd.f32 %v1540_v16, %v1526_v15  ;;  %v3146_v40 = vor.u32 %v4007_v38, %v3145_v37  ;;  %v1501_v37 = vadd.f32 %v1500_v63, %v4447_v53 }
  0xe0   :  { %1771 = vmatpush.bf16.msra.mxu0 %v2966_v2 }
  0xe1   :  { %1785 = vmatpush.bf16.msra.mxu1 %v3254_v3 }
  0xe2   :  { %1799 = vmatpush.bf16.msra.mxu2 %v3542_v49  ;;  %v3362_v49 = vor.u32 %v4061_v46, %v3361_v44  ;;  %v1514_v2 = vpop.f32.mrf.mxu1 }
  0xe4   :  { %1772 = vmatpush.bf16.msra.mxu0 %v2930_v13  ;;  %v1528_v41 = vpop.f32.mrf.mxu2 }
  0xe5   :  { %1786 = vmatpush.bf16.msra.mxu1 %v3218_v14  ;;  %v1542_v43 = vpop.f32.mrf.mxu3 }
  0xe6   :  { %1800 = vmatpush.bf16.msra.mxu2 %v3506_v61  ;;  %v1543_v48 = vadd.f32 %v1542_v43, %v1528_v41  ;;  %v2786_v61 = vor.u32 %v3917_v59, %v2785_v58 }
  0xe8   :  { %1773 = vmatpush.bf16.msra.mxu0 %v2894_v28 }
  0xe9   :  { %1787 = vmatpush.bf16.msra.mxu1 %v3182_v29  ;;  %v1499_v29 = vadd.f32 %v4457_v30, %v4437_v22 }
  0xea   :  { %1801 = vmatpush.bf16.msra.mxu2 %v3470_v8 }
  0xec   :  { %1774 = vmatpush.bf16.msra.mxu0 %v2858_v39  ;;  %v1515_v39 = vadd.f32 %v1514_v2, %v1501_v37 }
  0xed   :  { %1788 = vmatpush.bf16.msra.mxu1 %v3146_v40 }
  0xee   :  { %1802 = vmatpush.bf16.msra.mxu2 %v3434_v23  ;;  %v1459_v23 = vadd.f32 %v4455_v12, %v4453_v1  ;;  %v1941_v40 = vpack.c.bf16 %v1515_v39, %v1515_v39 }
  0xf0   :  { %1775 = vmatpush.bf16.msra.mxu0 %v2822_v54  ;;  %v1473_v24 = vadd.f32 %v4450_v56, %v1459_v23 }
  0xf1   :  { %1789 = vmatpush.bf16.msra.mxu1 %v3110_v55 }
  0xf2   :  { %1803 = vmatpush.bf16.msra.mxu2 %v3398_v35  ;;  %v1812_v26 = vpack.c.bf16 %v1473_v24, %v1473_v24  ;;  %v1513_v35 = vadd.f32 %v4459_v42, %v1499_v29 }
  0xf4   :  { %1776 = vmatpush.bf16.msra.mxu0 %v2786_v61  ;;  %v1554_v3 = vpop.f32.mrf.mxu0  ;;  %v1940_v56 = vpack.c.bf16 %v1513_v35, %v1513_v35 }
  0xf5   :  { %1790 = vmatpush.bf16.msra.mxu1 %v3074_v0  ;;  %v4464_v4 = vadd.f32 %v1554_v3, %v1541_v21  ;;  %v1568_v6 = vpop.f32.mrf.mxu1 }
  0xf6   :  { %1804 = vmatpush.bf16.msra.mxu2 %v3362_v49 }
  0xf7   :  { %1777 = vmatmul.bf16.vlgmr.msra.gmra.mxu0 %v4411_v57 }
  0xf8   :  { %1791 = vmatmul.bf16.vlgmr.msra.gmra.mxu1 %v4414_v5 }
  0xf9   :  { %1805 = vmatmul.bf16.vlgmr.msra.gmra.mxu2 %v4418_v20  ;;  %v1457_v20 = vadd.f32 %v4445_v45, %v4441_v31 }
  0xfb   :  { %v1471_v57 = vadd.f32 %v4439_v27, %v1457_v20 }
  0xfc   :  { %v1582_v7 = vpop.f32.mrf.mxu2  ;;  %v1556_v10 = vpop.f32.mrf.mxu0 }
  0xfd   :  { %v1583_v8 = vadd.f32 %v1582_v7, %v1568_v6  ;;  %v1596_v9 = vpop.f32.mrf.mxu3  ;;  %v4466_v13 = vadd.f32 %v1556_v10, %v1543_v48  ;;  %v1570_v15 = vpop.f32.mrf.mxu1  ;;  %v1811_v19 = vpack.c.bf16 %v1471_v57, %v1471_v57 }
  0xff   :  { %v1597_v11 = vadd.f32 %v1596_v9, %v1583_v8 }
 0x101   :  { %v1813_v14 = vpack.c.bf16 %v1597_v11, %v1597_v11 }
 0x103   :  { %1824 = vmatpush.bf16.xpose.msra.mxu3 %v1813_v14 }
 0x104   :  { %v1584_v5 = vpop.f32.mrf.mxu2 }
 0x105   :  { %v1585_v16 = vadd.f32 %v1584_v5, %v1570_v15  ;;  %v1598_v17 = vpop.f32.mrf.mxu3 }
 0x107   :  { %v1599_v18 = vadd.f32 %v1598_v17, %v1585_v16 }
 0x109   :  { %v1814_v21 = vpack.c.bf16 %v1599_v18, %v1599_v18 }
 0x10a   :  { %1825 = vmatmul.bf16.vlgmr.msra.gmra.mxu3 %v1811_v19 }
 0x10b   :  { %1837 = vmatpush.bf16.xpose.msrb.mxu3 %v1814_v21 }
 0x114   :  { %v1610_v25 = vpop.f32.mrf.mxu0 }
 0x115   :  { %v1624_v31 = vpop.f32.mrf.mxu1 }
 0x116   :  { %v1625_v45 = vadd.f32 %v1624_v31, %v1610_v25 }
 0x11a   :  { %1838 = vmatmul.bf16.vlgmr.msrb.gmra.mxu3 %v1812_v26 }
 0x11c   :  { %v1638_v28 = vpop.f32.mrf.mxu2  ;;  %v1612_v33 = vpop.f32.mrf.mxu0 }
 0x11d   :  { %v1639_v27 = vadd.f32 %v1638_v28, %v1625_v45  ;;  %v1626_v34 = vpop.f32.mrf.mxu1  ;;  %v1652_v41 = vpop.f32.mrf.mxu3 }
 0x11e   :  { %v1627_v36 = vadd.f32 %v1626_v34, %v1612_v33 }
 0x11f   :  { %v1942_v32 = vpack.c.bf16 %v1639_v27, %v1639_v27 }
 0x121   :  { %1953 = vmatpush.bf16.xpose.msrb.mxu2 %v1942_v32 }
 0x124   :  { %v1640_v1 = vpop.f32.mrf.mxu2 }
 0x125   :  { %v1641_v12 = vadd.f32 %v1640_v1, %v1627_v36  ;;  %v1654_v44 = vpop.f32.mrf.mxu3 }
 0x127   :  { %v1943_v38 = vpack.c.bf16 %v1641_v12, %v1641_v12 }
 0x128   :  { %1954 = vmatmul.bf16.vlgmr.msrb.gmra.mxu2 %v1940_v56 }
 0x129   :  { %1966 = vmatpush.bf16.xpose.msra.mxu3 %v1943_v38 }
 0x130   :  { %1967 = vmatmul.bf16.vlgmr.msra.gmra.mxu3 %v1941_v40 }
 0x134   :  { %v1666_v22 = vpop.f32.mrf.mxu0 }
 0x135   :  { %v1667_v30 = vadd.f32 %v1666_v22, %v1652_v41  ;;  %v1680_v43 = vpop.f32.mrf.mxu1 }
 0x137   :  { %v4478_v46 = vadd.f32 %v1680_v43, %v1667_v30 }
 0x13c   :  { %v1668_v42 = vpop.f32.mrf.mxu0  ;;  %v1694_v50 = vpop.f32.mrf.mxu2 }
 0x13d   :  { %v1669_v47 = vadd.f32 %v1668_v42, %v1654_v44  ;;  %v1682_v48 = vpop.f32.mrf.mxu1  ;;  %v1708_v53 = vpop.f32.mrf.mxu3 }
 0x13e   :  { %v1709_v51 = vadd.f32 %v1708_v53, %v1694_v50 }
 0x13f   :  { %v4480_v49 = vadd.f32 %v1682_v48, %v1669_v47 }
 0x144   :  { %v1696_v52 = vpop.f32.mrf.mxu2 }
 0x145   :  { %v1710_v58 = vpop.f32.mrf.mxu3 }
 0x146   :  { %v1711_v61 = vadd.f32 %v1710_v58, %v1696_v52 }
 0x154   :  { %v1722_v54 = vpop.f32.mrf.mxu0 }
 0x155   :  { %v1723_v55 = vadd.f32 %v1722_v54, %v1709_v51  ;;  %v1736_v62 = vpop.f32.mrf.mxu1 }
 0x157   :  { %v1815_v59 = vpack.c.bf16 %v1723_v55, %v1723_v55 }
 0x159   :  { %v1873_v60 = vsel %vm1871_vm0, %v1815_v59, 0 }
 0x15a   :  { %1882 = vmatpush.bf16.msrb.mxu1 %v1873_v60 }
 0x15c   :  { %v1724_v63 = vpop.f32.mrf.mxu0  ;;  %v1750_v0 = vpop.f32.mrf.mxu2 }
 0x15d   :  { %v1725_v2 = vadd.f32 %v1724_v63, %v1711_v61  ;;  %v1764_v6 = vpop.f32.mrf.mxu3  ;;  %v1751_v7 = vadd.f32 %v1750_v0, %v1736_v62  ;;  %v1738_v9 = vpop.f32.mrf.mxu1 }
 0x15f   :  { %v1816_v3 = vpack.c.bf16 %v1725_v2, %v1725_v2  ;;  %v1765_v10 = vadd.f32 %v1764_v6, %v1751_v7  ;;  %v4172_v6 = vld [vmem:[#allocation7 + $0x178] sm:$0xf0] }
 0x161   :  { %v1892_v8 = vsel %vm1871_vm0, %v1816_v3, 0  ;;  %v1944_v57 = vpack.c.bf16 %v1765_v10, %v1765_v10  ;;  %v3713_v3 = vld [vmem:[#allocation7 + $0x170] sm:$0xf] }
 0x162   :  { %1901 = vmatpush.bf16.msra.mxu1 %v1892_v8  ;;  %v3714_v7 = vor.u32 %v4172_v6, %v3713_v3  ;;  %v3701_v8 = vld [vmem:[#allocation7 + $0x158] sm:$0xf] }
 0x163   :  { %v2000_v16 = vsel %vm1871_vm0, %v1944_v57, 0  ;;  %v3677_v57 = vld [vmem:[#allocation7 + $0x128] sm:$0xf] }
 0x164   :  { %v1752_v11 = vpop.f32.mrf.mxu2  ;;  %2009 = vmatpush.bf16.msrb.mxu0 %v2000_v16  ;;  %v3665_v16 = vld [vmem:[#allocation7 + $0x110] sm:$0xf] }
 0x165   :  { %v1753_v20 = vadd.f32 %v1752_v11, %v1738_v9  ;;  %v1766_v14 = vpop.f32.mrf.mxu3  ;;  %v4169_v9 = vld [vmem:[#allocation7 + $0x160] sm:$0xf0]  ;;  %v3689_v11 = vld [vmem:[#allocation7 + $0x140] sm:$0xf] }
 0x166   :  { %v3702_v10 = vor.u32 %v4169_v9, %v3701_v8 }
 0x167   :  { %v1767_v15 = vadd.f32 %v1766_v14, %v1753_v20  ;;  %v4166_v20 = vld [vmem:[#allocation7 + $0x148] sm:$0xf0] }
 0x168   :  { %2223 = vmatpush.bf16.msra.mxu0 %v3714_v7  ;;  %v3690_v14 = vor.u32 %v4166_v20, %v3689_v11  ;;  %v4135_v11 = vld [vmem:[#allocation7 + $0x50] sm:$0xf0]  ;;  %v2409_v20 = vpack.c.bf16 %v4478_v46, %v4478_v46  ;;  %v3717_v46 = vld [vmem:[#allocation7] sm:$0xf] }
 0x169   :  { %v1945_v5 = vpack.c.bf16 %v1767_v15, %v1767_v15  ;;  %v4163_v15 = vld [vmem:[#allocation7 + $0x130] sm:$0xf0] }
 0x16b   :  { %v4486_v17 = vsel %vm1871_vm0, %v1945_v5, 0  ;;  %v3678_v5 = vor.u32 %v4163_v15, %v3677_v57  ;;  %v3741_v57 = vld [vmem:[#allocation7 + $0x30] sm:$0xf]  ;;  %v4132_v15 = vld [vmem:[#allocation7 + $0x38] sm:$0xf0] }
 0x16c   :  { %2224 = vmatpush.bf16.msra.mxu0 %v3702_v10  ;;  %v3753_v10 = vld [vmem:[#allocation7 + $0x48] sm:$0xf] }
 0x170   :  { %2225 = vmatpush.bf16.msra.mxu0 %v3690_v14  ;;  %v3754_v14 = vor.u32 %v4135_v11, %v3753_v10  ;;  %v3791_v10 = vld [vmem:[#allocation7 + $0x9c] sm:$0xf0]  ;;  %v3797_v11 = vld [vmem:[#allocation7 + $0x98] sm:$0xf] }
 0x174   :  { %v1778_v18 = vpop.f32.mrf.mxu0  ;;  %2226 = vmatpush.bf16.msra.mxu0 %v3678_v5 }
 0x175   :  { %v1792_v19 = vpop.f32.mrf.mxu1 }
 0x176   :  { %v1793_v23 = vadd.f32 %v1792_v19, %v1778_v18  ;;  %v4160_v18 = vld [vmem:[#allocation7 + $0x118] sm:$0xf0] }
 0x177   :  { %v3666_v19 = vor.u32 %v4160_v18, %v3665_v16  ;;  %v3742_v16 = vor.u32 %v4132_v15, %v3741_v57  ;;  %v4140_v15 = vld [vmem:[#allocation7 + $0x7c] sm:$0xf] }
 0x179   :  { %2227 = vmatpush.bf16.msra.mxu0 %v3666_v19  ;;  %v3729_v19 = vld [vmem:[#allocation7 + $0x18] sm:$0xf] }
 0x17c   :  { %v1806_v21 = vpop.f32.mrf.mxu2  ;;  %v1780_v25 = vpop.f32.mrf.mxu0 }
 0x17d   :  { %v1807_v24 = vadd.f32 %v1806_v21, %v1793_v23  ;;  %v1794_v45 = vpop.f32.mrf.mxu1  ;;  %v3653_v21 = vld [vmem:[#allocation7 + $0xf8] sm:$0xf]  ;;  %v4157_v23 = vld [vmem:[#allocation7 + $0x100] sm:$0xf0] }
 0x17e   :  { %v1795_v26 = vadd.f32 %v1794_v45, %v1780_v25  ;;  %v4154_v45 = vld [vmem:[#allocation7 + $0xe8] sm:$0xf0] }
 0x17f   :  { %v2411_v31 = vpack.c.bf16 %v1807_v24, %v1807_v24  ;;  %v3654_v24 = vor.u32 %v4157_v23, %v3653_v21  ;;  %v4129_v21 = vld [vmem:[#allocation7 + $0x20] sm:$0xf0] }
 0x180   :  { %v3730_v23 = vor.u32 %v4129_v21, %v3729_v19 }
 0x181   :  { %v4489_v28 = vsel %vm1871_vm0, %v2411_v31, 0  ;;  %2228 = vmatpush.bf16.msra.mxu0 %v3654_v24  ;;  %v3641_v31 = vld [vmem:[#allocation7 + $0xe0] sm:$0xf]  ;;  %v4126_v24 = vld [vmem:[#allocation7 + $0x8] sm:$0xf0] }
 0x184   :  { %v1808_v27 = vpop.f32.mrf.mxu2 }
 0x185   :  { %v1809_v29 = vadd.f32 %v1808_v27, %v1795_v26  ;;  %v3642_v26 = vor.u32 %v4154_v45, %v3641_v31  ;;  %v3629_v27 = vld [vmem:[#allocation7 + $0xc8] sm:$0xf]  ;;  %v2410_v31 = vpack.c.bf16 %v4480_v49, %v4480_v49  ;;  %v3681_v45 = vld [vmem:[#allocation7 + $0x138] sm:$0xf]  ;;  %v4159_v49 = vld [vmem:[#allocation7 + $0x110] sm:$0xf0] }
 0x187   :  { %v2412_v32 = vpack.c.bf16 %v1809_v29, %v1809_v29  ;;  %2229 = vmatpush.bf16.msra.mxu0 %v3642_v26  ;;  %v4151_v29 = vld [vmem:[#allocation7 + $0xd0] sm:$0xf0]  ;;  %v4164_v26 = vld [vmem:[#allocation7 + $0x13c] sm:$0xf] }
 0x189   :  { %v4492_v33 = vsel %vm1871_vm0, %v2412_v32, 0  ;;  %v3630_v32 = vor.u32 %v4151_v29, %v3629_v27  ;;  %v3683_v29 = vld [vmem:[#allocation7 + $0x144] sm:$0xf0] }
 0x18b   :  { %2230 = vmatpush.bf16.msra.mxu0 %v3630_v32  ;;  %v3669_v32 = vld [vmem:[#allocation7 + $0x120] sm:$0xf] }
 0x18d   :  { %v1826_v34 = vpop.f32.mrf.mxu3 }
 0x18e   :  { %v1844_v35 = vsel %vm1843_vm1, %v1826_v34, -inf }
 0x18f   :  { %1845 = vmax.xlane.f32.xlu0 %v1844_v35 }
 0x195   :  { %v1828_v36 = vpop.f32.mrf.mxu3 }
 0x19d   :  { %v1839_v1 = vpop.f32.mrf.mxu3 }
 0x19e   :  { %v1847_v12 = vsel %vm1843_vm1, %v1839_v1, -inf }
 0x19f   :  { %1848 = vmax.xlane.f32.xlu0 %v1847_v12  ;;  %v3801_v12 = vld [vmem:[#allocation7 + $0xa8] sm:$0xf] }
 0x1a5   :  { %v1841_v56 = vpop.f32.mrf.mxu3 }
 0x1a6   :  { %v4147_v56 = vld [vmem:[#allocation7 + $0xb0] sm:$0xf0] }
 0x1ab   :  { %v1955_v37 = vpop.f32.mrf.mxu2 }
 0x1ac   :  { %v1972_v38 = vsel %vm1843_vm1, %v1955_v37, -inf }
 0x1ad   :  { %1973 = vmax.xlane.f32.xlu1 %v1972_v38 }
 0x1b3   :  { %v1957_v39 = vpop.f32.mrf.mxu2  ;;  %v1968_v40 = vpop.f32.mrf.mxu3 }
 0x1b4   :  { %v1975_v41 = vsel %vm1843_vm1, %v1968_v40, -inf  ;;  %v3802_v39 = vor.u32 %v4147_v56, %v3801_v12 }
 0x1b5   :  { %1976 = vmax.xlane.f32.xlu1 %v1975_v41  ;;  %v4144_v41 = vld [vmem:[#allocation7 + $0x98] sm:$0xf0] }
 0x1bb   :  { %v1970_v22 = vpop.f32.mrf.mxu3 }
 0x202   :  { %v1846_v30 = vpop.xlane.xlu0 %1845 }
 0x203   :  { %v1850_v43 = vsub.f32 %v1826_v34, %v1846_v30  ;;  %v3705_v30 = vld [vmem:[#allocation7 + $0x168] sm:$0xf] }
 0x205   :  { %v1852_v44 = vmul.f32 1.442695, %v1850_v43  ;;  %v4171_v43 = vld [vmem:[#allocation7 + $0x170] sm:$0xf0] }
 0x207   :  { %4208 = vpow2.f32 %v1852_v44  ;;  %v4170_v44 = vld [vmem:[#allocation7 + $0x16c] sm:$0xf] }
 0x20d   :  { %v4209_v42 = vpop.eup %4208 }
 0x20e   :  { %v1856_v47 = vsel %vm1843_vm1, %v4209_v42, 0.0 }
 0x20f   :  { %1857 = vadd.xlane.f32.xlu2 %v1856_v47  ;;  %v3706_v47 = vor.u32 %v4171_v43, %v3705_v30  ;;  %v4155_v43 = vld [vmem:[#allocation7 + $0xf4] sm:$0xf] }
 0x211   :  { %2195 = vmatpush.bf16.msra.mxu2 %v3706_v47 }
 0x212   :  { %v1849_v48 = vpop.xlane.xlu0 %1848 }
 0x213   :  { %v1851_v50 = vsub.f32 %v1839_v1, %v1849_v48  ;;  %v3693_v48 = vld [vmem:[#allocation7 + $0x150] sm:$0xf] }
 0x215   :  { %v1854_v53 = vmul.f32 1.442695, %v1851_v50  ;;  %v4168_v50 = vld [vmem:[#allocation7 + $0x158] sm:$0xf0] }
 0x217   :  { %4210 = vpow2.f32 %v1854_v53 }
 0x21d   :  { %v4211_v51 = vpop.eup %4210 }
 0x21e   :  { %v1859_v54 = vsel %vm1843_vm1, %v4211_v51, 0.0 }
 0x21f   :  { %1860 = vadd.xlane.f32.xlu2 %v1859_v54  ;;  %v3695_v54 = vld [vmem:[#allocation7 + $0x15c] sm:$0xf0] }
 0x220   :  { %v1974_v52 = vpop.xlane.xlu1 %1973 }
 0x221   :  { %v1978_v55 = vsub.f32 %v1955_v37, %v1974_v52  ;;  %v4167_v52 = vld [vmem:[#allocation7 + $0x154] sm:$0xf] }
 0x223   :  { %v1980_v58 = vmul.f32 1.442695, %v1978_v55  ;;  %v3694_v55 = vor.u32 %v4168_v50, %v3693_v48  ;;  %v3633_v48 = vld [vmem:[#allocation7 + $0xd8] sm:$0xf]  ;;  %v4153_v50 = vld [vmem:[#allocation7 + $0xe0] sm:$0xf0] }
 0x225   :  { %4212 = vpow2.f32 %v1980_v58  ;;  %v3777_v58 = vld [vmem:[#allocation7 + $0x78] sm:$0xf]  ;;  %2196 = vmatpush.bf16.msra.mxu2 %v3694_v55  ;;  %v4150_v55 = vld [vmem:[#allocation7 + $0xc8] sm:$0xf0] }
 0x228   :  { %v1977_v59 = vpop.xlane.xlu1 %1976 }
 0x229   :  { %v1979_v60 = vsub.f32 %v1968_v40, %v1977_v59  ;;  %v3789_v40 = vld [vmem:[#allocation7 + $0x90] sm:$0xf]  ;;  %v4141_v59 = vld [vmem:[#allocation7 + $0x80] sm:$0xf0] }
 0x22b   :  { %v4500_v61 = vpop.eup %4212  ;;  %v1982_v62 = vmul.f32 1.442695, %v1979_v60  ;;  %v3698_v60 = vor.u32 %v4167_v52, %v3695_v54  ;;  %v3635_v52 = vld [vmem:[#allocation7 + $0xe4] sm:$0xf0] }
 0x22c   :  { %v1984_v63 = vsel %vm1843_vm1, %v4500_v61, 0.0 }
 0x22d   :  { %4214 = vpow2.f32 %v1982_v62  ;;  %1985 = vadd.xlane.f32.xlu0 %v1984_v63  ;;  %v3778_v62 = vor.u32 %v4141_v59, %v3777_v58  ;;  %v3765_v63 = vld [vmem:[#allocation7 + $0x60] sm:$0xf]  ;;  %v4149_v58 = vld [vmem:[#allocation7 + $0xc4] sm:$0xf] }
 0x233   :  { %v4504_v0 = vpop.eup %4214 }
 0x234   :  { %v1987_v2 = vsel %vm1843_vm1, %v4504_v0, 0.0 }
 0x235   :  { %1988 = vadd.xlane.f32.xlu1 %v1987_v2  ;;  %v4138_v2 = vld [vmem:[#allocation7 + $0x68] sm:$0xf0] }
 0x236   :  { %v3766_v8 = vor.u32 %v4138_v2, %v3765_v63  ;;  %v3803_v63 = vld [vmem:[#allocation7 + $0xb4] sm:$0xf0] }
 0x282   :  { %v1858_v25 = vpop.xlane.xlu2 %1857 }
 0x283   :  { %4216 = vrcp.f32 %v1858_v25  ;;  %v3718_v25 = vor.u32 %v4126_v24, %v3717_v46  ;;  %v3767_v46 = vld [vmem:[#allocation7 + $0x6c] sm:$0xf0]  ;;  %v3773_v24 = vld [vmem:[#allocation7 + $0x68] sm:$0xf] }
 0x289   :  { %v4217_v34 = vpop.eup %4216 }
 0x28a   :  { %v1864_v35 = vmul.f32 %v4217_v34, %v4209_v42  ;;  %v3707_v42 = vld [vmem:[#allocation7 + $0x174] sm:$0xf0]  ;;  %v4162_v34 = vld [vmem:[#allocation7 + $0x128] sm:$0xf0] }
 0x28b   :  { %v3670_v12 = vor.u32 %v4162_v34, %v3669_v32  ;;  %v4136_v34 = vld [vmem:[#allocation7 + $0x58] sm:$0xf0] }
 0x28c   :  { %v1866_v36 = vpack.c.bf16 %v1864_v35, %v1864_v35  ;;  %v3686_v35 = vor.u32 %v4164_v26, %v3683_v29  ;;  %v3755_v26 = vld [vmem:[#allocation7 + $0x54] sm:$0xf0] }
 0x28e   :  { %3615 = vmatmul.msk.bf16.vlgmr.msrb.gmra.mxu1 %vm1843_vm1, %v1866_v36  ;;  %v4161_v36 = vld [vmem:[#allocation7 + $0x124] sm:$0xf] }
 0x28f   :  { %2028 = vmatpush.bf16.msrb.mxu1 %v4486_v17  ;;  %v3710_v17 = vor.u32 %v4170_v44, %v3707_v42  ;;  %v3647_v44 = vld [vmem:[#allocation7 + $0xfc] sm:$0xf0] }
 0x290   :  { %v3650_v42 = vor.u32 %v4155_v43, %v3647_v44  ;;  %v4125_v43 = vld [vmem:[#allocation7 + $0x4] sm:$0xf]  ;;  %v3719_v44 = vld [vmem:[#allocation7 + $0xc] sm:$0xf0] }
 0x291   :  { %2209 = vmatpush.bf16.msrb.mxu3 %v3710_v17  ;;  %v3634_v17 = vor.u32 %v4153_v50, %v3633_v48  ;;  %v4127_v48 = vld [vmem:[#allocation7 + $0x10] sm:$0xf0] }
 0x292   :  { %v1861_v1 = vpop.xlane.xlu2 %1860 }
 0x293   :  { %4218 = vrcp.f32 %v1861_v1  ;;  %v3671_v1 = vld [vmem:[#allocation7 + $0x12c] sm:$0xf0] }
 0x294   :  { %v3674_v56 = vor.u32 %v4161_v36, %v3671_v1  ;;  %v4131_v36 = vld [vmem:[#allocation7 + $0x34] sm:$0xf]  ;;  %v3743_v1 = vld [vmem:[#allocation7 + $0x3c] sm:$0xf0] }
 0x295   :  { %2210 = vmatpush.bf16.msrb.mxu3 %v3698_v60  ;;  %v3623_v60 = vld [vmem:[#allocation7 + $0xcc] sm:$0xf0] }
 0x296   :  { %v3626_v2 = vor.u32 %v4149_v58, %v3623_v60 }
 0x299   :  { %v4219_v37 = vpop.eup %4218  ;;  %2211 = vmatpush.bf16.msrb.mxu3 %v3686_v35 }
 0x29a   :  { %v1865_v38 = vmul.f32 %v4219_v37, %v4211_v51  ;;  %v3790_v51 = vor.u32 %v4144_v41, %v3789_v40  ;;  %v3657_v37 = vld [vmem:[#allocation7 + $0x108] sm:$0xf]  ;;  %v3659_v40 = vld [vmem:[#allocation7 + $0x114] sm:$0xf0]  ;;  %v3645_v41 = vld [vmem:[#allocation7 + $0xf0] sm:$0xf] }
 0x29c   :  { %v1867_v22 = vpack.c.bf16 %v1865_v38, %v1865_v38  ;;  %v4158_v38 = vld [vmem:[#allocation7 + $0x10c] sm:$0xf] }
 0x29d   :  { %2212 = vmatpush.bf16.msrb.mxu3 %v3674_v56  ;;  %v3662_v30 = vor.u32 %v4158_v38, %v3659_v40  ;;  %v3746_v56 = vor.u32 %v4131_v36, %v3743_v1  ;;  %v3731_v38 = vld [vmem:[#allocation7 + $0x24] sm:$0xf0]  ;;  %v3737_v40 = vld [vmem:[#allocation7 + $0x20] sm:$0xf]  ;;  %v4193_v36 = vld [vmem:[#allocation7 + $0x220] sm:$0xf0] }
 0x29e   :  { %3616 = vmatmul.msk.bf16.vlgmr.msra.gmra.mxu1 %vm1843_vm1, %v1867_v22  ;;  %v4156_v22 = vld [vmem:[#allocation7 + $0xf8] sm:$0xf0] }
 0x29f   :  { %2365 = vmatpush.bf16.msra.mxu1 %v3802_v39  ;;  %v3658_v39 = vor.u32 %v4159_v49, %v3657_v37  ;;  %v3646_v47 = vor.u32 %v4156_v22, %v3645_v41  ;;  %v4133_v37 = vld [vmem:[#allocation7 + $0x40] sm:$0xf0]  ;;  %v4128_v49 = vld [vmem:[#allocation7 + $0x1c] sm:$0xf]  ;;  %v4130_v41 = vld [vmem:[#allocation7 + $0x28] sm:$0xf0] }
 0x2a0   :  { %v1986_v53 = vpop.xlane.xlu0 %1985  ;;  %v3734_v22 = vor.u32 %v4128_v49, %v3731_v38  ;;  %v4188_v49 = vld [vmem:[#allocation7 + $0x1fc] sm:$0xf]  ;;  %v3877_v38 = vld [vmem:[#allocation7 + $0x204] sm:$0xf0] }
 0x2a1   :  { %4220 = vrcp.f32 %v1986_v53  ;;  %2213 = vmatpush.bf16.msrb.mxu3 %v3662_v30  ;;  %v4152_v53 = vld [vmem:[#allocation7 + $0xdc] sm:$0xf]  ;;  %v3738_v30 = vor.u32 %v4130_v41, %v3737_v40  ;;  %v4190_v40 = vld [vmem:[#allocation7 + $0x208] sm:$0xf0] }
 0x2a2   :  { %v3638_v54 = vor.u32 %v4152_v53, %v3635_v52  ;;  %v3722_v53 = vor.u32 %v4125_v43, %v3719_v44  ;;  %v3880_v43 = vor.u32 %v4188_v49, %v3877_v38 }
 0x2a3   :  { %2366 = vmatpush.bf16.msra.mxu1 %v3790_v51  ;;  %v3621_v51 = vld [vmem:[#allocation7 + $0xc0] sm:$0xf] }
 0x2a4   :  { %v3622_v59 = vor.u32 %v4150_v55, %v3621_v51  ;;  %v2408_v51 = vpack.c.bf16 %v4466_v13, %v4466_v13 }
 0x2a5   :  { %2214 = vmatpush.bf16.msrb.mxu3 %v3650_v42  ;;  %v3725_v42 = vld [vmem:[#allocation7 + $0x8] sm:$0xf] }
 0x2a7   :  { %v4221_v3 = vpop.eup %4220  ;;  %2367 = vmatpush.bf16.msra.mxu1 %v3778_v62  ;;  %v4146_v62 = vld [vmem:[#allocation7 + $0xac] sm:$0xf] }
 0x2a8   :  { %v1992_v6 = vmul.f32 %v4221_v3, %v4500_v61  ;;  %v1989_v7 = vpop.xlane.xlu1 %1988  ;;  %v3806_v3 = vor.u32 %v4146_v62, %v3803_v63 }
 0x2a9   :  { %4222 = vrcp.f32 %v1989_v7  ;;  %2215 = vmatpush.bf16.msrb.mxu3 %v3638_v54  ;;  %v4148_v7 = vld [vmem:[#allocation7 + $0xb8] sm:$0xf0] }
 0x2aa   :  { %v1994_v9 = vpack.c.bf16 %v1992_v6, %v1992_v6  ;;  %v3809_v6 = vld [vmem:[#allocation7 + $0xb0] sm:$0xf] }
 0x2ab   :  { %2368 = vmatpush.bf16.msra.mxu1 %v3766_v8  ;;  %v3810_v8 = vor.u32 %v4148_v7, %v3809_v6 }
 0x2ac   :  { %3617 = vmatmul.msk.bf16.vlgmr.msrb.gmra.mxu0 %vm1843_vm1, %v1994_v9  ;;  %v4143_v9 = vld [vmem:[#allocation7 + $0x94] sm:$0xf] }
 0x2ad   :  { %2420 = vmatpush.bf16.xpose.msrb.mxu0 %v2409_v20  ;;  %2216 = vmatpush.bf16.msrb.mxu3 %v3626_v2  ;;  %v3794_v20 = vor.u32 %v4143_v9, %v3791_v10 }
 0x2af   :  { %v4223_v5 = vpop.eup %4222  ;;  %2369 = vmatpush.bf16.msra.mxu1 %v3754_v14  ;;  %v4145_v14 = vld [vmem:[#allocation7 + $0xa0] sm:$0xf0] }
 0x2b0   :  { %v1993_v61 = vmul.f32 %v4223_v5, %v4504_v0  ;;  %v4165_v0 = vld [vmem:[#allocation7 + $0x140] sm:$0xf0]  ;;  %v3798_v57 = vor.u32 %v4145_v14, %v3797_v11  ;;  %v3779_v5 = vld [vmem:[#allocation7 + $0x84] sm:$0xf0] }
 0x2b1   :  { %v3682_v27 = vor.u32 %v4165_v0, %v3681_v45  ;;  %2393 = vmatpush.bf16.msra.mxu3 %v3810_v8  ;;  %v4134_v0 = vld [vmem:[#allocation7 + $0x4c] sm:$0xf] }
 0x2b2   :  { %v1995_v18 = vpack.c.bf16 %v1993_v61, %v1993_v61  ;;  %v3785_v61 = vld [vmem:[#allocation7 + $0x80] sm:$0xf]  ;;  %v3758_v32 = vor.u32 %v4134_v0, %v3755_v26  ;;  %v3887_v26 = vld [vmem:[#allocation7 + $0x210] sm:$0xf] }
 0x2b3   :  { %2370 = vmatpush.bf16.msra.mxu1 %v3742_v16  ;;  %2197 = vmatpush.bf16.msra.mxu2 %v3682_v27  ;;  %v3782_v16 = vor.u32 %v4140_v15, %v3779_v5  ;;  %v3761_v27 = vld [vmem:[#allocation7 + $0x50] sm:$0xf] }
 0x2b4   :  { %3618 = vmatmul.msk.bf16.vlgmr.msrb.gmra.mxu1 %vm1843_vm1, %v1995_v18  ;;  %v4142_v18 = vld [vmem:[#allocation7 + $0x88] sm:$0xf0]  ;;  %v3762_v35 = vor.u32 %v4136_v34, %v3761_v27  ;;  %v4192_v27 = vld [vmem:[#allocation7 + $0x218] sm:$0xf0]  ;;  %v3889_v34 = vld [vmem:[#allocation7 + $0x21c] sm:$0xf0] }
 0x2b5   :  { %2394 = vmatpush.bf16.msra.mxu3 %v3798_v57  ;;  %v3786_v19 = vor.u32 %v4142_v18, %v3785_v61 }
 0x2b7   :  { %2371 = vmatpush.bf16.msra.mxu1 %v3730_v23  ;;  %2198 = vmatpush.bf16.msra.mxu2 %v3670_v12  ;;  %v4137_v23 = vld [vmem:[#allocation7 + $0x64] sm:$0xf]  ;;  %v3749_v12 = vld [vmem:[#allocation7 + $0x38] sm:$0xf] }
 0x2b9   :  { %2395 = vmatpush.bf16.msra.mxu3 %v3786_v19  ;;  %v3899_v19 = vld [vmem:[#allocation7 + $0x228] sm:$0xf] }
 0x2bb   :  { %2372 = vmatpush.bf16.msra.mxu1 %v3718_v25  ;;  %2199 = vmatpush.bf16.msra.mxu2 %v3658_v39  ;;  %v3770_v25 = vor.u32 %v4137_v23, %v3767_v46  ;;  %v3750_v39 = vor.u32 %v4133_v37, %v3749_v12  ;;  %v4194_v23 = vld [vmem:[#allocation7 + $0x22c] sm:$0xf]  ;;  %v4189_v37 = vld [vmem:[#allocation7 + $0x200] sm:$0xf0] }
 0x2bf   :  { %2433 = vmatpush.bf16.xpose.msrb.mxu1 %v2410_v31  ;;  %2200 = vmatpush.bf16.msra.mxu2 %v3646_v47  ;;  %v4139_v31 = vld [vmem:[#allocation7 + $0x70] sm:$0xf0] }
 0x2c0   :  { %v3774_v45 = vor.u32 %v4139_v31, %v3773_v24  ;;  %v3901_v24 = vld [vmem:[#allocation7 + $0x234] sm:$0xf0]  ;;  %v4196_v31 = vld [vmem:[#allocation7 + $0x238] sm:$0xf0] }
 0x2c2   :  { %2396 = vmatpush.bf16.msra.mxu3 %v3774_v45  ;;  %v3904_v45 = vor.u32 %v4194_v23, %v3901_v24  ;;  %v4177_v23 = vld [vmem:[#allocation7 + $0x1a0] sm:$0xf0] }
 0x2c3   :  { %2201 = vmatpush.bf16.msra.mxu2 %v3634_v17  ;;  %v3726_v17 = vor.u32 %v4127_v48, %v3725_v42 }
 0x2c6   :  { %2397 = vmatpush.bf16.msra.mxu3 %v3762_v35  ;;  %v3895_v35 = vld [vmem:[#allocation7 + $0x218] sm:$0xf] }
 0x2c7   :  { %2202 = vmatpush.bf16.msra.mxu2 %v3622_v59  ;;  %v3896_v12 = vor.u32 %v4193_v36, %v3895_v35  ;;  %v3817_v35 = vld [vmem:[#allocation7 + $0x18c] sm:$0xf0]  ;;  %v3823_v36 = vld [vmem:[#allocation7 + $0x188] sm:$0xf] }
 0x2ca   :  { %2398 = vmatpush.bf16.msra.mxu3 %v3750_v39  ;;  %v3883_v39 = vld [vmem:[#allocation7 + $0x200] sm:$0xf] }
 0x2cb   :  { %2379 = vmatpush.bf16.msrb.mxu2 %v3806_v3  ;;  %v3884_v44 = vor.u32 %v4190_v40, %v3883_v39 }
 0x2ce   :  { %2399 = vmatpush.bf16.msra.mxu3 %v3738_v30 }
 0x2cf   :  { %2380 = vmatpush.bf16.msrb.mxu2 %v3794_v20 }
 0x2d2   :  { %2400 = vmatpush.bf16.msra.mxu3 %v3726_v17  ;;  %v3863_v17 = vld [vmem:[#allocation7 + $0x1e0] sm:$0xf] }
 0x2d3   :  { %2381 = vmatpush.bf16.msrb.mxu2 %v3782_v16 }
 0x2d7   :  { %2382 = vmatpush.bf16.msrb.mxu2 %v3770_v25  ;;  %v3907_v25 = vld [vmem:[#allocation7 + $0x230] sm:$0xf] }
 0x2d8   :  { %v3908_v0 = vor.u32 %v4196_v31, %v3907_v25  ;;  %v3829_v25 = vld [vmem:[#allocation7 + $0x1a4] sm:$0xf0]  ;;  %v3835_v31 = vld [vmem:[#allocation7 + $0x1a0] sm:$0xf] }
 0x2db   :  { %2383 = vmatpush.bf16.msrb.mxu2 %v3758_v32  ;;  %v3888_v32 = vor.u32 %v4192_v27, %v3887_v26  ;;  %v3815_v27 = vld [vmem:[#allocation7 + $0x180] sm:$0xf] }
 0x2df   :  { %2384 = vmatpush.bf16.msrb.mxu2 %v3746_v56  ;;  %v3875_v56 = vld [vmem:[#allocation7 + $0x1f8] sm:$0xf] }
 0x2e0   :  { %v3876_v30 = vor.u32 %v4189_v37, %v3875_v56 }
 0x2e3   :  { %2385 = vmatpush.bf16.msrb.mxu2 %v3734_v22 }
 0x2e7   :  { %2386 = vmatpush.bf16.msrb.mxu2 %v3722_v53 }
 0x30b   :  { %v1884_v21 = vpop.f32.mrf.mxu1 }
 0x313   :  { %v1886_v29 = vpop.f32.mrf.mxu1 }
 0x314   :  { %v4191_v29 = vld [vmem:[#allocation7 + $0x214] sm:$0xf] }
 0x315   :  { %v3892_v1 = vor.u32 %v4191_v29, %v3889_v34  ;;  %v4174_v29 = vld [vmem:[#allocation7 + $0x188] sm:$0xf0] }
 0x316   :  { %v3816_v34 = vor.u32 %v4174_v29, %v3815_v27 }
 0x31b   :  { %v1903_v47 = vpop.f32.mrf.mxu1 }
 0x31c   :  { %v1907_v50 = vpack.c.bf16 %v1903_v47, %v1884_v21  ;;  %v4195_v21 = vld [vmem:[#allocation7 + $0x230] sm:$0xf0] }
 0x31d   :  { %v3900_v46 = vor.u32 %v4195_v21, %v3899_v19  ;;  %v3827_v21 = vld [vmem:[#allocation7 + $0x198] sm:$0xf] }
 0x31e   :  { %2373 = vmatmul.bf16.vlgmr.msra.gmra.mxu1 %v1907_v50  ;;  %v3828_v24 = vor.u32 %v4177_v23, %v3827_v21 }
 0x31f   :  { %2495 = vmatpush.bf16.msra.mxu1 %v4492_v33  ;;  %v2407_v33 = vpack.c.bf16 %v4464_v4, %v4464_v4 }
 0x323   :  { %v1905_v52 = vpop.f32.mrf.mxu1 }
 0x324   :  { %v4186_v52 = vld [vmem:[#allocation7 + $0x1e8] sm:$0xf0] }
 0x329   :  { %v2011_v54 = vpop.f32.mrf.mxu0 }
 0x32e   :  { %2434 = vmatmul.bf16.vlgmr.msrb.gmra.mxu1 %v2408_v51  ;;  %v3864_v51 = vor.u32 %v4186_v52, %v3863_v17 }
 0x331   :  { %v2013_v55 = vpop.f32.mrf.mxu0  ;;  %v2030_v58 = vpop.f32.mrf.mxu1 }
 0x332   :  { %v2034_v59 = vpack.c.bf16 %v2030_v58, %v2011_v54  ;;  %v4185_v54 = vld [vmem:[#allocation7 + $0x1e4] sm:$0xf]  ;;  %v3865_v55 = vld [vmem:[#allocation7 + $0x1ec] sm:$0xf0]  ;;  %v3871_v58 = vld [vmem:[#allocation7 + $0x1e8] sm:$0xf] }
 0x334   :  { %2203 = vmatmul.bf16.vlgmr.msra.gmra.mxu2 %v2034_v59  ;;  %2217 = vmatmul.bf16.vlgmr.msrb.gmra.mxu3 %v2034_v59 }
 0x335   :  { %2231 = vmatmul.bf16.vlgmr.msra.gmra.mxu0 %v2034_v59  ;;  %2662 = vmatpush.bf16.msra.mxu2 %v3900_v46  ;;  %v4187_v59 = vld [vmem:[#allocation7 + $0x1f0] sm:$0xf0]  ;;  %v4176_v46 = vld [vmem:[#allocation7 + $0x19c] sm:$0xf] }
 0x336   :  { %2476 = vmatpush.bf16.msra.mxu0 %v4489_v28  ;;  %2676 = vmatpush.bf16.msrb.mxu3 %v3904_v45  ;;  %v4178_v45 = vld [vmem:[#allocation7 + $0x1a8] sm:$0xf0] }
 0x337   :  { %v3836_v26 = vor.u32 %v4178_v45, %v3835_v31 }
 0x339   :  { %v2032_v60 = vpop.f32.mrf.mxu1  ;;  %2663 = vmatpush.bf16.msra.mxu2 %v3888_v32  ;;  %v4173_v32 = vld [vmem:[#allocation7 + $0x184] sm:$0xf] }
 0x33a   :  { %2677 = vmatpush.bf16.msrb.mxu3 %v3892_v1  ;;  %v3868_v60 = vor.u32 %v4185_v54, %v3865_v55  ;;  %v4175_v1 = vld [vmem:[#allocation7 + $0x190] sm:$0xf0] }
 0x33b   :  { %v3824_v56 = vor.u32 %v4175_v1, %v3823_v36 }
 0x33d   :  { %2664 = vmatpush.bf16.msra.mxu2 %v3876_v30 }
 0x33e   :  { %2678 = vmatpush.bf16.msrb.mxu3 %v3880_v43 }
 0x341   :  { %2665 = vmatpush.bf16.msra.mxu2 %v3864_v51 }
 0x342   :  { %2679 = vmatpush.bf16.msrb.mxu3 %v3868_v60 }
 0x344   :  { %2387 = vmatmul.bf16.vlgmr.msrb.gmra.mxu2 %v1907_v50  ;;  %2401 = vmatmul.bf16.vlgmr.msra.gmra.mxu3 %v1907_v50 }
 0x345   :  { %2421 = vmatmul.bf16.vlgmr.msrb.gmra.mxu0 %v2407_v33  ;;  %v3872_v33 = vor.u32 %v4187_v59, %v3871_v58 }
 0x346   :  { %2690 = vmatpush.bf16.msrb.mxu0 %v3908_v0  ;;  %v3832_v0 = vor.u32 %v4176_v46, %v3829_v25 }
 0x34a   :  { %2691 = vmatpush.bf16.msrb.mxu0 %v3896_v12  ;;  %v3820_v12 = vor.u32 %v4173_v32, %v3817_v35 }
 0x34e   :  { %2692 = vmatpush.bf16.msrb.mxu0 %v3884_v44 }
 0x352   :  { %2693 = vmatpush.bf16.msrb.mxu0 %v3872_v33 }
 0x39b   :  { %v4525_v62 = vpop.f32.mrf.mxu1 }
 0x3a3   :  { %v4527_v63 = vpop.f32.mrf.mxu1 }
 0x3ab   :  { %v2435_v13 = vpop.f32.mrf.mxu1 }
 0x3ac   :  { %v2442_v2 = vsel %vm1843_vm1, %v2435_v13, -inf }
 0x3ad   :  { %2443 = vmax.xlane.f32.xlu0 %v2442_v2  ;;  %v4183_v2 = vld [vmem:[#allocation7 + $0x1d0] sm:$0xf0] }
 0x3b2   :  { %v4530_v3 = vpop.f32.mrf.mxu0 }
 0x3b3   :  { %v2437_v6 = vpop.f32.mrf.mxu1 }
 0x3b4   :  { %v4182_v6 = vld [vmem:[#allocation7 + $0x1cc] sm:$0xf] }
 0x3ba   :  { %v4532_v7 = vpop.f32.mrf.mxu0 }
 0x3c2   :  { %v2422_v28 = vpop.f32.mrf.mxu0 }
 0x3c3   :  { %v2439_v8 = vsel %vm1843_vm1, %v2422_v28, -inf }
 0x3c4   :  { %2440 = vmax.xlane.f32.xlu2 %v2439_v8  ;;  %v3853_v8 = vld [vmem:[#allocation7 + $0x1d4] sm:$0xf0] }
 0x3ca   :  { %v2424_v4 = vpop.f32.mrf.mxu0 }
 0x3cb   :  { %v3859_v4 = vld [vmem:[#allocation7 + $0x1d0] sm:$0xf] }
 0x420   :  { %v2444_v9 = vpop.xlane.xlu0 %2443 }
 0x421   :  { %v2446_v10 = vsub.f32 %v2435_v13, %v2444_v9  ;;  %v3851_v13 = vld [vmem:[#allocation7 + $0x1c8] sm:$0xf]  ;;  %v4184_v9 = vld [vmem:[#allocation7 + $0x1d8] sm:$0xf0] }
 0x423   :  { %v2449_v11 = vmul.f32 1.442695, %v2446_v10  ;;  %v3856_v10 = vor.u32 %v4182_v6, %v3853_v8 }
 0x425   :  { %4224 = vpow2.f32 %v2449_v11  ;;  %v3860_v11 = vor.u32 %v4184_v9, %v3859_v4  ;;  %2680 = vmatpush.bf16.msrb.mxu3 %v3856_v10 }
 0x427   :  { %2694 = vmatpush.bf16.msrb.mxu0 %v3860_v11 }
 0x42b   :  { %v4225_v20 = vpop.eup %4224 }
 0x42c   :  { %v2454_v14 = vsel %vm1843_vm1, %v4225_v20, 0.0 }
 0x42d   :  { %2455 = vadd.xlane.f32.xlu2 %v2454_v14  ;;  %v4180_v14 = vld [vmem:[#allocation7 + $0x1b8] sm:$0xf0] }
 0x437   :  { %v2441_v57 = vpop.xlane.xlu2 %2440 }
 0x438   :  { %v2445_v15 = vsub.f32 %v2422_v28, %v2441_v57  ;;  %v3852_v28 = vor.u32 %v4183_v2, %v3851_v13  ;;  %v4179_v57 = vld [vmem:[#allocation7 + $0x1b4] sm:$0xf] }
 0x43a   :  { %v2447_v5 = vmul.f32 1.442695, %v2445_v15  ;;  %2666 = vmatpush.bf16.msra.mxu2 %v3852_v28 }
 0x43c   :  { %4226 = vpow2.f32 %v2447_v5  ;;  %v3841_v5 = vld [vmem:[#allocation7 + $0x1bc] sm:$0xf0] }
 0x442   :  { %v4227_v61 = vpop.eup %4226 }
 0x443   :  { %v2451_v16 = vsel %vm1843_vm1, %v4227_v61, 0.0 }
 0x444   :  { %2452 = vadd.xlane.f32.xlu1 %v2451_v16  ;;  %v4181_v16 = vld [vmem:[#allocation7 + $0x1c0] sm:$0xf0] }
 0x4a0   :  { %v2456_v18 = vpop.xlane.xlu2 %2455 }
 0x4a1   :  { %4228 = vrcp.f32 %v2456_v18  ;;  %v3844_v18 = vor.u32 %v4179_v57, %v3841_v5 }
 0x4a3   :  { %2681 = vmatpush.bf16.msrb.mxu3 %v3844_v18 }
 0x4a7   :  { %v4229_v41 = vpop.eup %4228  ;;  %2682 = vmatpush.bf16.msrb.mxu3 %v3832_v0 }
 0x4a8   :  { %v2460_v22 = vmul.f32 %v4229_v41, %v4225_v20  ;;  %v3839_v20 = vld [vmem:[#allocation7 + $0x1b0] sm:$0xf]  ;;  %v2204_v41 = vpop.f32.mrf.mxu2 }
 0x4a9   :  { %v3840_v15 = vor.u32 %v4180_v14, %v3839_v20  ;;  %v2375_v55 = vadd.f32 %v4525_v62, %v2204_v41 }
 0x4aa   :  { %v2462_v47 = vpack.c.bf16 %v2460_v22, %v2460_v22  ;;  %v2218_v22 = vpop.f32.mrf.mxu3 }
 0x4ab   :  { %2667 = vmatpush.bf16.msra.mxu2 %v3840_v15  ;;  %2683 = vmatpush.bf16.msrb.mxu3 %v3820_v12 }
 0x4ac   :  { %3812 = vmatmul.msk.bf16.vlgmr.msra.gmra.mxu1 %vm1843_vm1, %v2462_v47 }
 0x4af   :  { %2668 = vmatpush.bf16.msra.mxu2 %v3828_v24 }
 0x4b0   :  { %v2206_v30 = vpop.f32.mrf.mxu2 }
 0x4b1   :  { %v2377_v11 = vadd.f32 %v4527_v63, %v2206_v30 }
 0x4b2   :  { %v2220_v43 = vpop.f32.mrf.mxu3 }
 0x4b3   :  { %2669 = vmatpush.bf16.msra.mxu2 %v3816_v34 }
 0x4b7   :  { %v2453_v42 = vpop.xlane.xlu1 %2452 }
 0x4b8   :  { %4230 = vrcp.f32 %v2453_v42  ;;  %v2388_v44 = vpop.f32.mrf.mxu2  ;;  %v2710_v42 = vld [vmem:[#allocation8] sm:$0x7] }
 0x4b9   :  { %v2714_v17 = vperm.slane %v2710_v42, 2  ;;  %v2389_v58 = vadd.f32 %v2388_v44, %v2218_v22  ;;  %v2712_v59 = vperm.slane %v2710_v42, 0  ;;  %v2713_v60 = vperm.slane %v2710_v42, 1 }
 0x4ba   :  { %v2402_v47 = vpop.f32.mrf.mxu3 }
 0x4be   :  { %v4231_v48 = vpop.eup %4230 }
 0x4bf   :  { %v2459_v50 = vmul.f32 %v4231_v48, %v4227_v61  ;;  %v3847_v61 = vld [vmem:[#allocation7 + $0x1b8] sm:$0xf] }
 0x4c0   :  { %v3848_v19 = vor.u32 %v4181_v16, %v3847_v61  ;;  %v2390_v48 = vpop.f32.mrf.mxu2 }
 0x4c1   :  { %v2461_v53 = vpack.c.bf16 %v2459_v50, %v2459_v50  ;;  %v2391_v62 = vadd.f32 %v2390_v48, %v2220_v43 }
 0x4c2   :  { %2695 = vmatpush.bf16.msrb.mxu0 %v3848_v19  ;;  %v2404_v50 = vpop.f32.mrf.mxu3 }
 0x4c3   :  { %3811 = vmatmul.msk.bf16.vlgmr.msra.gmra.mxu0 %vm1843_vm1, %v2461_v53  ;;  %v2403_v53 = vadd.f32 %v2402_v47, %v4530_v3  ;;  %v2405_v28 = vadd.f32 %v2404_v50, %v4532_v7 }
 0x4c6   :  { %2696 = vmatpush.bf16.msrb.mxu0 %v3836_v26 }
 0x4ca   :  { %2697 = vmatpush.bf16.msrb.mxu0 %v3824_v56 }
 0x529   :  { %v2497_v37 = vpop.f32.mrf.mxu1 }
 0x531   :  { %v2499_v49 = vpop.f32.mrf.mxu1 }
 0x540   :  { %v2478_v38 = vpop.f32.mrf.mxu0 }
 0x541   :  { %v2501_v39 = vpack.c.bf16 %v2497_v37, %v2478_v38 }
 0x543   :  { %2670 = vmatmul.bf16.vlgmr.msra.gmra.mxu2 %v2501_v39  ;;  %2684 = vmatmul.bf16.vlgmr.msrb.gmra.mxu3 %v2501_v39 }
 0x544   :  { %2698 = vmatmul.bf16.vlgmr.msrb.gmra.mxu0 %v2501_v39 }
 0x548   :  { %v2480_v40 = vpop.f32.mrf.mxu0 }
 0x5c1   :  { %v2699_v52 = vpop.f32.mrf.mxu0 }
 0x5c2   :  { %v2706_v54 = vadd.f32 %v2699_v52, %v2403_v53 }
 0x5c4   :  { %v2720_v51 = vadd.f32 %v2714_v17, %v2706_v54 }
 0x5c6   :  { %2726 = vst [vmem:[#allocation10 + $0x10] sm:$0xff] %v2720_v51  ;;  %v2671_v33 = vpop.f32.mrf.mxu2  ;;  %v2685_v13 = vpop.f32.mrf.mxu3 }
 0x5c7   :  { %v2704_v2 = vadd.f32 %v2671_v33, %v2375_v55  ;;  %v2705_v6 = vadd.f32 %v2685_v13, %v2389_v58 }
 0x5c9   :  { %v2718_v8 = vadd.f32 %v2712_v59, %v2704_v2  ;;  %v2719_v4 = vadd.f32 %v2713_v60, %v2705_v6  ;;  %v2701_v9 = vpop.f32.mrf.mxu0 }
 0x5ca   :  { %v2709_v3 = vadd.f32 %v2701_v9, %v2405_v28 }
 0x5cb   :  { %2724 = vst [vmem:[#allocation10] sm:$0xff] %v2718_v8 }
 0x5cc   :  { %2725 = vst [vmem:[#allocation10 + $0x8] sm:$0xff] %v2719_v4  ;;  %v2723_v10 = vadd.f32 %v2714_v17, %v2709_v3 }
 0x5ce   :  { %2729 = vst [vmem:[#allocation10 + $0x28] sm:$0xff] %v2723_v10  ;;  %v2673_v20 = vpop.f32.mrf.mxu2  ;;  %v2687_v14 = vpop.f32.mrf.mxu3 }
 0x5cf   :  { %v2707_v57 = vadd.f32 %v2673_v20, %v2377_v11  ;;  %v2708_v15 = vadd.f32 %v2687_v14, %v2391_v62 }
 0x5d1   :  { %v2721_v7 = vadd.f32 %v2712_v59, %v2707_v57  ;;  %v2722_v5 = vadd.f32 %v2713_v60, %v2708_v15 }
 0x5d3   :  { %2727 = vst [vmem:[#allocation10 + $0x18] sm:$0xff] %v2721_v7 }
 0x5d4   :  { %2728 = vst [vmem:[#allocation10 + $0x20] sm:$0xff] %v2722_v5 }
 0x5d5   :  { %2742 = dma.vmem_to_hbm [thread:$0]  %s2735_s3, 768, %s2737_s15, [#allocation4], %s4364_s27, %s4364_s27, %s4365_s28  }
 0x5d6   :  { %4358 = dma.done.wait [#allocation4], 768  }
 0x5d7   :  { %4359 = vsyncadd [#allocation4], 4294966528 }
 0x5d8   :  { %2747 = vsyncpa [#allocation3], 1 }
 0x5d9   :  { %2748 = vsyncpa [#allocation6], 1 }
 0x5da   :  { %2749 = vsyncpa [#allocation9], 1 }
 0x5db   :  { %2750 = vsyncpa [#allocation4], 1 }

</bundles_post_ra>
